<compile_context>
chip_gen: v7x
topology: tpu7x:2x2x1
jax: 0.10.0
libtpu: 0.0.40
codegen_flags: <defaults>
</compile_context>

<pallas_src>
import functools

import jax
import jax.numpy as jnp
from jax.experimental import pallas as pl
from jax.experimental.pallas import tpu as pltpu


# --------------------------- fused-weight construction -----------------------

def _build_fused_params(params, T):
    """Builds the wavefront-fused weights (pure JAX, outside the kernel).

    Fused state layout (width SP = round_up(2H+D, 128)):
        lanes [0:H)      -> h1 / c1      (layer 1)
        lanes [H:2H)     -> h2 / c2      (layer 2)
        lanes [2H:2H+D)  -> h3 / c3      (layer 3)
        lanes [2H+D:SP)  -> zero padding (stays exactly 0)
    Fused gate layout (width 4*SP): gate block g (i,f,g,o) occupies columns
        [g*SP, (g+1)*SP) with the same per-layer sub-layout as the state.
    """
    (wih1, whh1, b1, wih2, whh2, b2, wih3, whh3, b3, wr, br) = params
    D = wih1.shape[0]
    H = whh1.shape[0]
    S3 = 2 * H + D
    SP = ((S3 + 127) // 128) * 128

    wbig = jnp.zeros((SP, 4 * SP), jnp.float32)     # recurrent / cross-layer
    bbig = jnp.zeros((1, 4 * SP), jnp.float32)      # all biases, fused layout
    wih1f = jnp.zeros((D, 4 * SP), jnp.float32)     # x -> layer-1 gates
    for g in range(4):
        c0 = g * SP
        # layer 1 (input x handled by wih1f; recurrence by rows 0:H of wbig)
        wih1f = wih1f.at[:, c0:c0 + H].set(wih1[:, g * H:(g + 1) * H])
        wbig = wbig.at[0:H, c0:c0 + H].set(whh1[:, g * H:(g + 1) * H])
        bbig = bbig.at[:, c0:c0 + H].set(b1[:, g * H:(g + 1) * H])
        # layer 2 (input = h1 rows 0:H; recurrence = h2 rows H:2H)
        wbig = wbig.at[0:H, c0 + H:c0 + 2 * H].set(wih2[:, g * H:(g + 1) * H])
        wbig = wbig.at[H:2 * H, c0 + H:c0 + 2 * H].set(whh2[:, g * H:(g + 1) * H])
        bbig = bbig.at[:, c0 + H:c0 + 2 * H].set(b2[:, g * H:(g + 1) * H])
        # layer 3 (input = h2 rows H:2H; recurrence = h3 rows 2H:2H+D)
        wbig = wbig.at[H:2 * H, c0 + 2 * H:c0 + 2 * H + D].set(wih3[:, g * D:(g + 1) * D])
        wbig = wbig.at[2 * H:S3, c0 + 2 * H:c0 + 2 * H + D].set(whh3[:, g * D:(g + 1) * D])
        bbig = bbig.at[:, c0 + 2 * H:c0 + 2 * H + D].set(b3[:, g * D:(g + 1) * D])

    # Residual Linear computed straight in the lane-dense (B, T*D) layout:
    # block-diagonal weight with wr repeated T times, bias tiled T times.
    wres = jnp.zeros((T * D, T * D), jnp.float32)
    for t in range(T):
        wres = wres.at[t * D:(t + 1) * D, t * D:(t + 1) * D].set(wr)
    bres = jnp.tile(br, (1, T))
    return wih1f, wbig, bbig, wres, bres, SP


# --------------------------------- kernel ------------------------------------

def lstm_wavefront_kernel(xtm_ref, xslab_ref, wih1f_ref, wbig_ref, bbig_ref,
                          wres_ref, bres_ref, out_ref, *, B, T, D, H):
    SP = wbig_ref.shape[0]          # padded fused state width (multiple of 128)
    L3 = 2 * H                      # lane offset of layer-3 state

    # ---- bulk, non-recurrent MXU work (off the serial chain) ---------------
    # Layer-1 input projections for every timestep, time-major rows (t*B + b),
    # already scattered into the fused/padded gate layout (zero elsewhere).
    g1 = jnp.dot(xtm_ref[...], wih1f_ref[...], preferred_element_type=jnp.float32)
    # Residual Linear, directly in the lane-dense output layout (B, T*D).
    res = (jnp.dot(xslab_ref[...], wres_ref[...], preferred_element_type=jnp.float32)
           + bres_ref[...])
    bbig = bbig_ref[...]

    # Per-layer lane masks (loop-invariant, built from iota -> cheap constants).
    lane = jax.lax.broadcasted_iota(jnp.int32, (1, SP), 1)
    m_l1 = lane < H
    m_l2 = (lane >= H) & (lane < 2 * H)
    m_l3 = (lane >= L3) & (lane < L3 + D)

    h = jnp.zeros((B, SP), jnp.float32)   # [h1 | h2 | h3 | 0-pad]
    c = jnp.zeros((B, SP), jnp.float32)

    outs = []
    # Static wavefront loop (T small & static): step s advances layer-1 at
    # t=s, layer-2 at t=s-1, layer-3 at t=s-2.  All three read the state
    # snapshot taken at the top of the step, so one fused matmul suffices.
    for s in range(T + 2):
        l1 = s < T
        l2 = 1 <= s <= T
        l3 = 2 <= s <= T + 1

        gates = jnp.dot(h, wbig_ref[...], preferred_element_type=jnp.float32) + bbig
        if l1:
            gates = gates + g1[s * B:(s + 1) * B, :]

        # 128-lane-aligned gate slices: pure vreg selection, no XLU extraction.
        i = jax.nn.sigmoid(gates[:, 0 * SP:1 * SP])
        f = jax.nn.sigmoid(gates[:, 1 * SP:2 * SP])
        g = jnp.tanh(gates[:, 2 * SP:3 * SP])
        o = jax.nn.sigmoid(gates[:, 3 * SP:4 * SP])
        c_new = f * c + i * g
        h_new = o * jnp.tanh(c_new)

        if l1 and l2 and l3:
            # steady state: all three layers active (pad lanes stay exactly 0)
            h, c = h_new, c_new
        else:
            # pipeline fill/drain: only update the active layers' lanes
            m = None
            for active, m_l in ((l1, m_l1), (l2, m_l2), (l3, m_l3)):
                if active:
                    m = m_l if m is None else (m | m_l)
            c = jnp.where(m, c_new, c)
            h = jnp.where(m, h_new, h)

        if l3:                                   # layer-3 output at t = s - 2
            outs.append(h[:, L3:L3 + D])

    # One lane-dense store of the whole (B, T*D) output slab.
    out_slab = jnp.concatenate(outs, axis=1)
    out_ref[...] = (out_slab + res).astype(out_ref.dtype)


# --------------------------------- wrapper -----------------------------------

def lstm_forward(x, params):
    """x: (B, T, D) batch-first float32. Returns (B, T, D)."""
    B, T, D = x.shape
    H = params[1].shape[0]   # whh1: (H, 4H)

    wih1f, wbig, bbig, wres, bres, SP = _build_fused_params(params, T)

    # Two cheap wrapper-side views of x (XLA ops on tiny HBM tensors):
    #   time-major rows for the bulk layer-1 projection (contiguous per-step
    #   row slices inside the kernel), and the lane-dense slab for the residual.
    x_tm = jnp.transpose(x, (1, 0, 2)).reshape(T * B, D)
    x_slab = x.reshape(B, T * D)

    const2 = lambda i: (0, 0)
    kernel = functools.partial(lstm_wavefront_kernel, B=B, T=T, D=D, H=H)

    out_slab = pl.pallas_call(
        kernel,
        out_shape=jax.ShapeDtypeStruct((B, T * D), x.dtype),
        grid_spec=pltpu.PrefetchScalarGridSpec(
            num_scalar_prefetch=0,
            grid=(1,),   # whole problem in one invocation; wavefront unrolled inside
            in_specs=[
                pl.BlockSpec((T * B, D), const2),        # x, time-major rows
                pl.BlockSpec((B, T * D), const2),        # x, lane-dense slab
                pl.BlockSpec((D, 4 * SP), const2),       # fused layer-1 input weight
                pl.BlockSpec((SP, 4 * SP), const2),      # fused recurrent weight
                pl.BlockSpec((1, 4 * SP), const2),       # fused bias
                pl.BlockSpec((T * D, T * D), const2),    # block-diag residual weight
                pl.BlockSpec((1, T * D), const2),        # tiled residual bias
            ],
            out_specs=pl.BlockSpec((B, T * D), const2),
            scratch_shapes=[],                           # recurrence lives in registers
        ),
        compiler_params=pltpu.CompilerParams(
            dimension_semantics=("arbitrary",),          # recurrence: keep sequential
            vmem_limit_bytes=32 * 1024 * 1024),
    )(x_tm, x_slab, wih1f, wbig, bbig, wres, bres)

    return out_slab.reshape(B, T, D)


# ----------------------------- pure-JAX reference ---------------------------

def _lstm_layer_ref(x, wih, whh, b):
    B, T, _ = x.shape
    H = whh.shape[0]

    def step(carry, x_t):
        h, c = carry
        gates = x_t @ wih + h @ whh + b
        i = jax.nn.sigmoid(gates[:, 0 * H:1 * H])
        f = jax.nn.sigmoid(gates[:, 1 * H:2 * H])
        g = jnp.tanh(gates[:, 2 * H:3 * H])
        o = jax.nn.sigmoid(gates[:, 3 * H:4 * H])
        c = f * c + i * g
        h = o * jnp.tanh(c)
        return (h, c), h

    init = (jnp.zeros((B, H), jnp.float32), jnp.zeros((B, H), jnp.float32))
    _, hs = jax.lax.scan(step, init, jnp.transpose(x, (1, 0, 2)))
    return jnp.transpose(hs, (1, 0, 2))


def lstm_forward_ref(x, params):
    (wih1, whh1, b1, wih2, whh2, b2, wih3, whh3, b3, wr, br) = params
    r = x @ wr + br
    h = _lstm_layer_ref(x, wih1, whh1, b1)
    h = _lstm_layer_ref(h, wih2, whh2, b2)
    h = _lstm_layer_ref(h, wih3, whh3, b3)
    return h + r


# --------------------------------- main --------------------------------------

def _uniform(key, shape, scale):
    return jax.random.uniform(key, shape, jnp.float32, minval=-scale, maxval=scale)


if __name__ == "__main__":
    B, T = 2, 8
    D = 16   # latent_dim
    H = 32   # num_hidden_units_lstm

    key = jax.random.PRNGKey(0)
    keys = jax.random.split(key, 16)
    s_h = 1.0 / jnp.sqrt(H)
    s_d = 1.0 / jnp.sqrt(D)

    # Weights stored transposed relative to PyTorch (for right-multiply).
    # PyTorch bias_ih + bias_hh are folded into a single bias per layer.
    wih1 = _uniform(keys[0], (D, 4 * H), s_h)
    whh1 = _uniform(keys[1], (H, 4 * H), s_h)
    b1   = _uniform(keys[2], (1, 4 * H), s_h) + _uniform(keys[3], (1, 4 * H), s_h)
    wih2 = _uniform(keys[4], (H, 4 * H), s_h)
    whh2 = _uniform(keys[5], (H, 4 * H), s_h)
    b2   = _uniform(keys[6], (1, 4 * H), s_h) + _uniform(keys[7], (1, 4 * H), s_h)
    wih3 = _uniform(keys[8], (H, 4 * D), s_d)
    whh3 = _uniform(keys[9], (D, 4 * D), s_d)
    b3   = _uniform(keys[10], (1, 4 * D), s_d) + _uniform(keys[11], (1, 4 * D), s_d)
    wr   = _uniform(keys[12], (D, D), s_d)
    br   = _uniform(keys[13], (1, D), s_d)

    params = (wih1, whh1, b1, wih2, whh2, b2, wih3, whh3, b3, wr, br)

    x = jax.random.normal(keys[14], (B, T, D), jnp.float32)

    out = jax.block_until_ready(lstm_forward(x, params))
    ref = jax.block_until_ready(lstm_forward_ref(x, params))

    assert out.shape == (B, T, D)
    assert jnp.allclose(out, ref, rtol=1e-3, atol=1e-3)

    print("KERNEL_OK")
</pallas_src>

<mosaic_0001>
module attributes {stable_mosaic.version = 11 : i64} {
  func.func @lstm_wavefront_kernel(%arg0: i32, %arg1: memref<16x16xf32, #tpu.memory_space<vmem>>, %arg2: memref<2x128xf32, #tpu.memory_space<vmem>>, %arg3: memref<16x512xf32, #tpu.memory_space<vmem>>, %arg4: memref<128x512xf32, #tpu.memory_space<vmem>>, %arg5: memref<1x512xf32, #tpu.memory_space<vmem>>, %arg6: memref<128x128xf32, #tpu.memory_space<vmem>>, %arg7: memref<1x128xf32, #tpu.memory_space<vmem>>, %arg8: memref<2x128xf32, #tpu.memory_space<vmem>>) attributes {dimension_semantics = [#tpu.dimension_semantics<arbitrary>], iteration_bounds = array<i64: 1>, scalar_prefetch = 0 : i64, scratch_operands = 0 : i64, tpu.core_type = #tpu.core_type<tc>, window_params = [{pipeline_mode = #tpu.pipeline_mode<synchronous>, transform_indices = @transform_0, window_bounds = array<i64: 16, 16>}, {pipeline_mode = #tpu.pipeline_mode<synchronous>, transform_indices = @transform_1, window_bounds = array<i64: 2, 128>}, {pipeline_mode = #tpu.pipeline_mode<synchronous>, transform_indices = @transform_2, window_bounds = array<i64: 16, 512>}, {pipeline_mode = #tpu.pipeline_mode<synchronous>, transform_indices = @transform_3, window_bounds = array<i64: 128, 512>}, {pipeline_mode = #tpu.pipeline_mode<synchronous>, transform_indices = @transform_4, window_bounds = array<i64: 1, 512>}, {pipeline_mode = #tpu.pipeline_mode<synchronous>, transform_indices = @transform_5, window_bounds = array<i64: 128, 128>}, {pipeline_mode = #tpu.pipeline_mode<synchronous>, transform_indices = @transform_6, window_bounds = array<i64: 1, 128>}, {pipeline_mode = #tpu.pipeline_mode<synchronous>, transform_indices = @transform_7, window_bounds = array<i64: 2, 128>}]} {
    %c0 = arith.constant 0 : index
    %c0_0 = arith.constant 0 : index
    %0 = vector.load %arg1[%c0, %c0_0] : memref<16x16xf32, #tpu.memory_space<vmem>>, vector<16x16xf32>
    %c0_1 = arith.constant 0 : index
    %c0_2 = arith.constant 0 : index
    %1 = vector.load %arg3[%c0_1, %c0_2] : memref<16x512xf32, #tpu.memory_space<vmem>>, vector<16x512xf32>
    %cst = arith.constant dense<0.000000e+00> : vector<16x512xf32>
    %2 = tpu.matmul %0, %1, %cst {dimension_numbers = #tpu.dot_dimension_numbers<[1], [0], [0], [1], [0, 0, 1, 1], [], []>} : vector<16x16xf32>, vector<16x512xf32>, vector<16x512xf32> -> vector<16x512xf32>
    %c0_3 = arith.constant 0 : index
    %c0_4 = arith.constant 0 : index
    %3 = vector.load %arg2[%c0_3, %c0_4] : memref<2x128xf32, #tpu.memory_space<vmem>>, vector<2x128xf32>
    %c0_5 = arith.constant 0 : index
    %c0_6 = arith.constant 0 : index
    %4 = vector.load %arg6[%c0_5, %c0_6] : memref<128x128xf32, #tpu.memory_space<vmem>>, vector<128x128xf32>
    %cst_7 = arith.constant dense<0.000000e+00> : vector<2x128xf32>
    %5 = tpu.matmul %3, %4, %cst_7 {dimension_numbers = #tpu.dot_dimension_numbers<[1], [0], [0], [1], [0, 0, 1, 1], [], []>} : vector<2x128xf32>, vector<128x128xf32>, vector<2x128xf32> -> vector<2x128xf32>
    %c0_8 = arith.constant 0 : index
    %c0_9 = arith.constant 0 : index
    %6 = vector.load %arg7[%c0_8, %c0_9] : memref<1x128xf32, #tpu.memory_space<vmem>>, vector<1x128xf32>
    %7 = vector.broadcast %6 : vector<1x128xf32> to vector<2x128xf32>
    %8 = arith.addf %5, %7 : vector<2x128xf32>
    %c0_10 = arith.constant 0 : index
    %c0_11 = arith.constant 0 : index
    %9 = vector.load %arg5[%c0_10, %c0_11] : memref<1x512xf32, #tpu.memory_space<vmem>>, vector<1x512xf32>
    %10 = tpu.iota {dimensions = array<i32: 1>} : vector<1x128xi32>
    %c32_i32 = arith.constant 32 : i32
    %11 = vector.broadcast %c32_i32 : i32 to vector<1x128xi32>
    %12 = arith.cmpi slt, %10, %11 : vector<1x128xi32>
    %c32_i32_12 = arith.constant 32 : i32
    %13 = vector.broadcast %c32_i32_12 : i32 to vector<1x128xi32>
    %14 = arith.cmpi sge, %10, %13 : vector<1x128xi32>
    %c64_i32 = arith.constant 64 : i32
    %15 = vector.broadcast %c64_i32 : i32 to vector<1x128xi32>
    %16 = arith.cmpi slt, %10, %15 : vector<1x128xi32>
    %17 = arith.andi %14, %16 : vector<1x128xi1>
    %c64_i32_13 = arith.constant 64 : i32
    %18 = vector.broadcast %c64_i32_13 : i32 to vector<1x128xi32>
    %19 = arith.cmpi sge, %10, %18 : vector<1x128xi32>
    %c80_i32 = arith.constant 80 : i32
    %20 = vector.broadcast %c80_i32 : i32 to vector<1x128xi32>
    %21 = arith.cmpi slt, %10, %20 : vector<1x128xi32>
    %22 = arith.andi %19, %21 : vector<1x128xi1>
    %cst_14 = arith.constant 0.000000e+00 : f32
    %23 = vector.broadcast %cst_14 : f32 to vector<2x128xf32>
    %cst_15 = arith.constant 0.000000e+00 : f32
    %24 = vector.broadcast %cst_15 : f32 to vector<2x128xf32>
    %c0_16 = arith.constant 0 : index
    %c0_17 = arith.constant 0 : index
    %25 = vector.load %arg4[%c0_16, %c0_17] : memref<128x512xf32, #tpu.memory_space<vmem>>, vector<128x512xf32>
    %cst_18 = arith.constant dense<0.000000e+00> : vector<2x512xf32>
    %26 = tpu.matmul %23, %25, %cst_18 {dimension_numbers = #tpu.dot_dimension_numbers<[1], [0], [0], [1], [0, 0, 1, 1], [], []>} : vector<2x128xf32>, vector<128x512xf32>, vector<2x512xf32> -> vector<2x512xf32>
    %27 = vector.broadcast %9 : vector<1x512xf32> to vector<2x512xf32>
    %28 = arith.addf %26, %27 : vector<2x512xf32>
    %29 = vector.extract_strided_slice %2 {offsets = [0, 0], sizes = [2, 512], strides = [1, 1]} : vector<16x512xf32> to vector<2x512xf32>
    %30 = arith.addf %28, %29 : vector<2x512xf32>
    %31 = vector.extract_strided_slice %30 {offsets = [0, 0], sizes = [2, 128], strides = [1, 1]} : vector<2x512xf32> to vector<2x128xf32>
    %32 = arith.negf %31 : vector<2x128xf32>
    %33 = math.exp %32 : vector<2x128xf32>
    %cst_19 = arith.constant 1.000000e+00 : f32
    %34 = vector.broadcast %cst_19 : f32 to vector<2x128xf32>
    %35 = arith.addf %34, %33 : vector<2x128xf32>
    %36 = arith.divf %34, %35 : vector<2x128xf32>
    %37 = vector.extract_strided_slice %30 {offsets = [0, 128], sizes = [2, 128], strides = [1, 1]} : vector<2x512xf32> to vector<2x128xf32>
    %38 = arith.negf %37 : vector<2x128xf32>
    %39 = math.exp %38 : vector<2x128xf32>
    %cst_20 = arith.constant 1.000000e+00 : f32
    %40 = vector.broadcast %cst_20 : f32 to vector<2x128xf32>
    %41 = arith.addf %40, %39 : vector<2x128xf32>
    %42 = arith.divf %40, %41 : vector<2x128xf32>
    %43 = vector.extract_strided_slice %30 {offsets = [0, 256], sizes = [2, 128], strides = [1, 1]} : vector<2x512xf32> to vector<2x128xf32>
    %44 = math.tanh %43 : vector<2x128xf32>
    %45 = vector.extract_strided_slice %30 {offsets = [0, 384], sizes = [2, 128], strides = [1, 1]} : vector<2x512xf32> to vector<2x128xf32>
    %46 = arith.negf %45 : vector<2x128xf32>
    %47 = math.exp %46 : vector<2x128xf32>
    %cst_21 = arith.constant 1.000000e+00 : f32
    %48 = vector.broadcast %cst_21 : f32 to vector<2x128xf32>
    %49 = arith.addf %48, %47 : vector<2x128xf32>
    %50 = arith.divf %48, %49 : vector<2x128xf32>
    %51 = arith.mulf %42, %24 : vector<2x128xf32>
    %52 = arith.mulf %36, %44 : vector<2x128xf32>
    %53 = arith.addf %51, %52 : vector<2x128xf32>
    %54 = math.tanh %53 : vector<2x128xf32>
    %55 = arith.mulf %50, %54 : vector<2x128xf32>
    %56 = vector.shape_cast %12 : vector<1x128xi1> to vector<1x128xi1>
    %57 = vector.broadcast %56 : vector<1x128xi1> to vector<2x128xi1>
    %58 = arith.select %57, %53, %24 : vector<2x128xi1>, vector<2x128xf32>
    %59 = vector.shape_cast %12 : vector<1x128xi1> to vector<1x128xi1>
    %60 = vector.broadcast %59 : vector<1x128xi1> to vector<2x128xi1>
    %61 = arith.select %60, %55, %23 : vector<2x128xi1>, vector<2x128xf32>
    %c0_22 = arith.constant 0 : index
    %c0_23 = arith.constant 0 : index
    %62 = vector.load %arg4[%c0_22, %c0_23] : memref<128x512xf32, #tpu.memory_space<vmem>>, vector<128x512xf32>
    %cst_24 = arith.constant dense<0.000000e+00> : vector<2x512xf32>
    %63 = tpu.matmul %61, %62, %cst_24 {dimension_numbers = #tpu.dot_dimension_numbers<[1], [0], [0], [1], [0, 0, 1, 1], [], []>} : vector<2x128xf32>, vector<128x512xf32>, vector<2x512xf32> -> vector<2x512xf32>
    %64 = vector.broadcast %9 : vector<1x512xf32> to vector<2x512xf32>
    %65 = arith.addf %63, %64 : vector<2x512xf32>
    %66 = vector.extract_strided_slice %2 {offsets = [2, 0], sizes = [2, 512], strides = [1, 1]} : vector<16x512xf32> to vector<2x512xf32>
    %67 = arith.addf %65, %66 : vector<2x512xf32>
    %68 = vector.extract_strided_slice %67 {offsets = [0, 0], sizes = [2, 128], strides = [1, 1]} : vector<2x512xf32> to vector<2x128xf32>
    %69 = arith.negf %68 : vector<2x128xf32>
    %70 = math.exp %69 : vector<2x128xf32>
    %cst_25 = arith.constant 1.000000e+00 : f32
    %71 = vector.broadcast %cst_25 : f32 to vector<2x128xf32>
    %72 = arith.addf %71, %70 : vector<2x128xf32>
    %73 = arith.divf %71, %72 : vector<2x128xf32>
    %74 = vector.extract_strided_slice %67 {offsets = [0, 128], sizes = [2, 128], strides = [1, 1]} : vector<2x512xf32> to vector<2x128xf32>
    %75 = arith.negf %74 : vector<2x128xf32>
    %76 = math.exp %75 : vector<2x128xf32>
    %cst_26 = arith.constant 1.000000e+00 : f32
    %77 = vector.broadcast %cst_26 : f32 to vector<2x128xf32>
    %78 = arith.addf %77, %76 : vector<2x128xf32>
    %79 = arith.divf %77, %78 : vector<2x128xf32>
    %80 = vector.extract_strided_slice %67 {offsets = [0, 256], sizes = [2, 128], strides = [1, 1]} : vector<2x512xf32> to vector<2x128xf32>
    %81 = math.tanh %80 : vector<2x128xf32>
    %82 = vector.extract_strided_slice %67 {offsets = [0, 384], sizes = [2, 128], strides = [1, 1]} : vector<2x512xf32> to vector<2x128xf32>
    %83 = arith.negf %82 : vector<2x128xf32>
    %84 = math.exp %83 : vector<2x128xf32>
    %cst_27 = arith.constant 1.000000e+00 : f32
    %85 = vector.broadcast %cst_27 : f32 to vector<2x128xf32>
    %86 = arith.addf %85, %84 : vector<2x128xf32>
    %87 = arith.divf %85, %86 : vector<2x128xf32>
    %88 = arith.mulf %79, %58 : vector<2x128xf32>
    %89 = arith.mulf %73, %81 : vector<2x128xf32>
    %90 = arith.addf %88, %89 : vector<2x128xf32>
    %91 = math.tanh %90 : vector<2x128xf32>
    %92 = arith.mulf %87, %91 : vector<2x128xf32>
    %93 = arith.ori %12, %17 : vector<1x128xi1>
    %94 = vector.shape_cast %93 : vector<1x128xi1> to vector<1x128xi1>
    %95 = vector.broadcast %94 : vector<1x128xi1> to vector<2x128xi1>
    %96 = arith.select %95, %90, %58 : vector<2x128xi1>, vector<2x128xf32>
    %97 = vector.shape_cast %93 : vector<1x128xi1> to vector<1x128xi1>
    %98 = vector.broadcast %97 : vector<1x128xi1> to vector<2x128xi1>
    %99 = arith.select %98, %92, %61 : vector<2x128xi1>, vector<2x128xf32>
    %c0_28 = arith.constant 0 : index
    %c0_29 = arith.constant 0 : index
    %100 = vector.load %arg4[%c0_28, %c0_29] : memref<128x512xf32, #tpu.memory_space<vmem>>, vector<128x512xf32>
    %cst_30 = arith.constant dense<0.000000e+00> : vector<2x512xf32>
    %101 = tpu.matmul %99, %100, %cst_30 {dimension_numbers = #tpu.dot_dimension_numbers<[1], [0], [0], [1], [0, 0, 1, 1], [], []>} : vector<2x128xf32>, vector<128x512xf32>, vector<2x512xf32> -> vector<2x512xf32>
    %102 = vector.broadcast %9 : vector<1x512xf32> to vector<2x512xf32>
    %103 = arith.addf %101, %102 : vector<2x512xf32>
    %104 = vector.extract_strided_slice %2 {offsets = [4, 0], sizes = [2, 512], strides = [1, 1]} : vector<16x512xf32> to vector<2x512xf32>
    %105 = arith.addf %103, %104 : vector<2x512xf32>
    %106 = vector.extract_strided_slice %105 {offsets = [0, 0], sizes = [2, 128], strides = [1, 1]} : vector<2x512xf32> to vector<2x128xf32>
    %107 = arith.negf %106 : vector<2x128xf32>
    %108 = math.exp %107 : vector<2x128xf32>
    %cst_31 = arith.constant 1.000000e+00 : f32
    %109 = vector.broadcast %cst_31 : f32 to vector<2x128xf32>
    %110 = arith.addf %109, %108 : vector<2x128xf32>
    %111 = arith.divf %109, %110 : vector<2x128xf32>
    %112 = vector.extract_strided_slice %105 {offsets = [0, 128], sizes = [2, 128], strides = [1, 1]} : vector<2x512xf32> to vector<2x128xf32>
    %113 = arith.negf %112 : vector<2x128xf32>
    %114 = math.exp %113 : vector<2x128xf32>
    %cst_32 = arith.constant 1.000000e+00 : f32
    %115 = vector.broadcast %cst_32 : f32 to vector<2x128xf32>
    %116 = arith.addf %115, %114 : vector<2x128xf32>
    %117 = arith.divf %115, %116 : vector<2x128xf32>
    %118 = vector.extract_strided_slice %105 {offsets = [0, 256], sizes = [2, 128], strides = [1, 1]} : vector<2x512xf32> to vector<2x128xf32>
    %119 = math.tanh %118 : vector<2x128xf32>
    %120 = vector.extract_strided_slice %105 {offsets = [0, 384], sizes = [2, 128], strides = [1, 1]} : vector<2x512xf32> to vector<2x128xf32>
    %121 = arith.negf %120 : vector<2x128xf32>
    %122 = math.exp %121 : vector<2x128xf32>
    %cst_33 = arith.constant 1.000000e+00 : f32
    %123 = vector.broadcast %cst_33 : f32 to vector<2x128xf32>
    %124 = arith.addf %123, %122 : vector<2x128xf32>
    %125 = arith.divf %123, %124 : vector<2x128xf32>
    %126 = arith.mulf %117, %96 : vector<2x128xf32>
    %127 = arith.mulf %111, %119 : vector<2x128xf32>
    %128 = arith.addf %126, %127 : vector<2x128xf32>
    %129 = math.tanh %128 : vector<2x128xf32>
    %130 = arith.mulf %125, %129 : vector<2x128xf32>
    %131 = vector.extract_strided_slice %130 {offsets = [0, 64], sizes = [2, 16], strides = [1, 1]} : vector<2x128xf32> to vector<2x16xf32>
    %c0_34 = arith.constant 0 : index
    %c0_35 = arith.constant 0 : index
    %132 = vector.load %arg4[%c0_34, %c0_35] : memref<128x512xf32, #tpu.memory_space<vmem>>, vector<128x512xf32>
    %cst_36 = arith.constant dense<0.000000e+00> : vector<2x512xf32>
    %133 = tpu.matmul %130, %132, %cst_36 {dimension_numbers = #tpu.dot_dimension_numbers<[1], [0], [0], [1], [0, 0, 1, 1], [], []>} : vector<2x128xf32>, vector<128x512xf32>, vector<2x512xf32> -> vector<2x512xf32>
    %134 = vector.broadcast %9 : vector<1x512xf32> to vector<2x512xf32>
    %135 = arith.addf %133, %134 : vector<2x512xf32>
    %136 = vector.extract_strided_slice %2 {offsets = [6, 0], sizes = [2, 512], strides = [1, 1]} : vector<16x512xf32> to vector<2x512xf32>
    %137 = arith.addf %135, %136 : vector<2x512xf32>
    %138 = vector.extract_strided_slice %137 {offsets = [0, 0], sizes = [2, 128], strides = [1, 1]} : vector<2x512xf32> to vector<2x128xf32>
    %139 = arith.negf %138 : vector<2x128xf32>
    %140 = math.exp %139 : vector<2x128xf32>
    %cst_37 = arith.constant 1.000000e+00 : f32
    %141 = vector.broadcast %cst_37 : f32 to vector<2x128xf32>
    %142 = arith.addf %141, %140 : vector<2x128xf32>
    %143 = arith.divf %141, %142 : vector<2x128xf32>
    %144 = vector.extract_strided_slice %137 {offsets = [0, 128], sizes = [2, 128], strides = [1, 1]} : vector<2x512xf32> to vector<2x128xf32>
    %145 = arith.negf %144 : vector<2x128xf32>
    %146 = math.exp %145 : vector<2x128xf32>
    %cst_38 = arith.constant 1.000000e+00 : f32
    %147 = vector.broadcast %cst_38 : f32 to vector<2x128xf32>
    %148 = arith.addf %147, %146 : vector<2x128xf32>
    %149 = arith.divf %147, %148 : vector<2x128xf32>
    %150 = vector.extract_strided_slice %137 {offsets = [0, 256], sizes = [2, 128], strides = [1, 1]} : vector<2x512xf32> to vector<2x128xf32>
    %151 = math.tanh %150 : vector<2x128xf32>
    %152 = vector.extract_strided_slice %137 {offsets = [0, 384], sizes = [2, 128], strides = [1, 1]} : vector<2x512xf32> to vector<2x128xf32>
    %153 = arith.negf %152 : vector<2x128xf32>
    %154 = math.exp %153 : vector<2x128xf32>
    %cst_39 = arith.constant 1.000000e+00 : f32
    %155 = vector.broadcast %cst_39 : f32 to vector<2x128xf32>
    %156 = arith.addf %155, %154 : vector<2x128xf32>
    %157 = arith.divf %155, %156 : vector<2x128xf32>
    %158 = arith.mulf %149, %128 : vector<2x128xf32>
    %159 = arith.mulf %143, %151 : vector<2x128xf32>
    %160 = arith.addf %158, %159 : vector<2x128xf32>
    %161 = math.tanh %160 : vector<2x128xf32>
    %162 = arith.mulf %157, %161 : vector<2x128xf32>
    %163 = vector.extract_strided_slice %162 {offsets = [0, 64], sizes = [2, 16], strides = [1, 1]} : vector<2x128xf32> to vector<2x16xf32>
    %c0_40 = arith.constant 0 : index
    %c0_41 = arith.constant 0 : index
    %164 = vector.load %arg4[%c0_40, %c0_41] : memref<128x512xf32, #tpu.memory_space<vmem>>, vector<128x512xf32>
    %cst_42 = arith.constant dense<0.000000e+00> : vector<2x512xf32>
    %165 = tpu.matmul %162, %164, %cst_42 {dimension_numbers = #tpu.dot_dimension_numbers<[1], [0], [0], [1], [0, 0, 1, 1], [], []>} : vector<2x128xf32>, vector<128x512xf32>, vector<2x512xf32> -> vector<2x512xf32>
    %166 = vector.broadcast %9 : vector<1x512xf32> to vector<2x512xf32>
    %167 = arith.addf %165, %166 : vector<2x512xf32>
    %168 = vector.extract_strided_slice %2 {offsets = [8, 0], sizes = [2, 512], strides = [1, 1]} : vector<16x512xf32> to vector<2x512xf32>
    %169 = arith.addf %167, %168 : vector<2x512xf32>
    %170 = vector.extract_strided_slice %169 {offsets = [0, 0], sizes = [2, 128], strides = [1, 1]} : vector<2x512xf32> to vector<2x128xf32>
    %171 = arith.negf %170 : vector<2x128xf32>
    %172 = math.exp %171 : vector<2x128xf32>
    %cst_43 = arith.constant 1.000000e+00 : f32
    %173 = vector.broadcast %cst_43 : f32 to vector<2x128xf32>
    %174 = arith.addf %173, %172 : vector<2x128xf32>
    %175 = arith.divf %173, %174 : vector<2x128xf32>
    %176 = vector.extract_strided_slice %169 {offsets = [0, 128], sizes = [2, 128], strides = [1, 1]} : vector<2x512xf32> to vector<2x128xf32>
    %177 = arith.negf %176 : vector<2x128xf32>
    %178 = math.exp %177 : vector<2x128xf32>
    %cst_44 = arith.constant 1.000000e+00 : f32
    %179 = vector.broadcast %cst_44 : f32 to vector<2x128xf32>
    %180 = arith.addf %179, %178 : vector<2x128xf32>
    %181 = arith.divf %179, %180 : vector<2x128xf32>
    %182 = vector.extract_strided_slice %169 {offsets = [0, 256], sizes = [2, 128], strides = [1, 1]} : vector<2x512xf32> to vector<2x128xf32>
    %183 = math.tanh %182 : vector<2x128xf32>
    %184 = vector.extract_strided_slice %169 {offsets = [0, 384], sizes = [2, 128], strides = [1, 1]} : vector<2x512xf32> to vector<2x128xf32>
    %185 = arith.negf %184 : vector<2x128xf32>
    %186 = math.exp %185 : vector<2x128xf32>
    %cst_45 = arith.constant 1.000000e+00 : f32
    %187 = vector.broadcast %cst_45 : f32 to vector<2x128xf32>
    %188 = arith.addf %187, %186 : vector<2x128xf32>
    %189 = arith.divf %187, %188 : vector<2x128xf32>
    %190 = arith.mulf %181, %160 : vector<2x128xf32>
    %191 = arith.mulf %175, %183 : vector<2x128xf32>
    %192 = arith.addf %190, %191 : vector<2x128xf32>
    %193 = math.tanh %192 : vector<2x128xf32>
    %194 = arith.mulf %189, %193 : vector<2x128xf32>
    %195 = vector.extract_strided_slice %194 {offsets = [0, 64], sizes = [2, 16], strides = [1, 1]} : vector<2x128xf32> to vector<2x16xf32>
    %c0_46 = arith.constant 0 : index
    %c0_47 = arith.constant 0 : index
    %196 = vector.load %arg4[%c0_46, %c0_47] : memref<128x512xf32, #tpu.memory_space<vmem>>, vector<128x512xf32>
    %cst_48 = arith.constant dense<0.000000e+00> : vector<2x512xf32>
    %197 = tpu.matmul %194, %196, %cst_48 {dimension_numbers = #tpu.dot_dimension_numbers<[1], [0], [0], [1], [0, 0, 1, 1], [], []>} : vector<2x128xf32>, vector<128x512xf32>, vector<2x512xf32> -> vector<2x512xf32>
    %198 = vector.broadcast %9 : vector<1x512xf32> to vector<2x512xf32>
    %199 = arith.addf %197, %198 : vector<2x512xf32>
    %200 = vector.extract_strided_slice %2 {offsets = [10, 0], sizes = [2, 512], strides = [1, 1]} : vector<16x512xf32> to vector<2x512xf32>
    %201 = arith.addf %199, %200 : vector<2x512xf32>
    %202 = vector.extract_strided_slice %201 {offsets = [0, 0], sizes = [2, 128], strides = [1, 1]} : vector<2x512xf32> to vector<2x128xf32>
    %203 = arith.negf %202 : vector<2x128xf32>
    %204 = math.exp %203 : vector<2x128xf32>
    %cst_49 = arith.constant 1.000000e+00 : f32
    %205 = vector.broadcast %cst_49 : f32 to vector<2x128xf32>
    %206 = arith.addf %205, %204 : vector<2x128xf32>
    %207 = arith.divf %205, %206 : vector<2x128xf32>
    %208 = vector.extract_strided_slice %201 {offsets = [0, 128], sizes = [2, 128], strides = [1, 1]} : vector<2x512xf32> to vector<2x128xf32>
    %209 = arith.negf %208 : vector<2x128xf32>
    %210 = math.exp %209 : vector<2x128xf32>
    %cst_50 = arith.constant 1.000000e+00 : f32
    %211 = vector.broadcast %cst_50 : f32 to vector<2x128xf32>
    %212 = arith.addf %211, %210 : vector<2x128xf32>
    %213 = arith.divf %211, %212 : vector<2x128xf32>
    %214 = vector.extract_strided_slice %201 {offsets = [0, 256], sizes = [2, 128], strides = [1, 1]} : vector<2x512xf32> to vector<2x128xf32>
    %215 = math.tanh %214 : vector<2x128xf32>
    %216 = vector.extract_strided_slice %201 {offsets = [0, 384], sizes = [2, 128], strides = [1, 1]} : vector<2x512xf32> to vector<2x128xf32>
    %217 = arith.negf %216 : vector<2x128xf32>
    %218 = math.exp %217 : vector<2x128xf32>
    %cst_51 = arith.constant 1.000000e+00 : f32
    %219 = vector.broadcast %cst_51 : f32 to vector<2x128xf32>
    %220 = arith.addf %219, %218 : vector<2x128xf32>
    %221 = arith.divf %219, %220 : vector<2x128xf32>
    %222 = arith.mulf %213, %192 : vector<2x128xf32>
    %223 = arith.mulf %207, %215 : vector<2x128xf32>
    %224 = arith.addf %222, %223 : vector<2x128xf32>
    %225 = math.tanh %224 : vector<2x128xf32>
    %226 = arith.mulf %221, %225 : vector<2x128xf32>
    %227 = vector.extract_strided_slice %226 {offsets = [0, 64], sizes = [2, 16], strides = [1, 1]} : vector<2x128xf32> to vector<2x16xf32>
    %c0_52 = arith.constant 0 : index
    %c0_53 = arith.constant 0 : index
    %228 = vector.load %arg4[%c0_52, %c0_53] : memref<128x512xf32, #tpu.memory_space<vmem>>, vector<128x512xf32>
    %cst_54 = arith.constant dense<0.000000e+00> : vector<2x512xf32>
    %229 = tpu.matmul %226, %228, %cst_54 {dimension_numbers = #tpu.dot_dimension_numbers<[1], [0], [0], [1], [0, 0, 1, 1], [], []>} : vector<2x128xf32>, vector<128x512xf32>, vector<2x512xf32> -> vector<2x512xf32>
    %230 = vector.broadcast %9 : vector<1x512xf32> to vector<2x512xf32>
    %231 = arith.addf %229, %230 : vector<2x512xf32>
    %232 = vector.extract_strided_slice %2 {offsets = [12, 0], sizes = [2, 512], strides = [1, 1]} : vector<16x512xf32> to vector<2x512xf32>
    %233 = arith.addf %231, %232 : vector<2x512xf32>
    %234 = vector.extract_strided_slice %233 {offsets = [0, 0], sizes = [2, 128], strides = [1, 1]} : vector<2x512xf32> to vector<2x128xf32>
    %235 = arith.negf %234 : vector<2x128xf32>
    %236 = math.exp %235 : vector<2x128xf32>
    %cst_55 = arith.constant 1.000000e+00 : f32
    %237 = vector.broadcast %cst_55 : f32 to vector<2x128xf32>
    %238 = arith.addf %237, %236 : vector<2x128xf32>
    %239 = arith.divf %237, %238 : vector<2x128xf32>
    %240 = vector.extract_strided_slice %233 {offsets = [0, 128], sizes = [2, 128], strides = [1, 1]} : vector<2x512xf32> to vector<2x128xf32>
    %241 = arith.negf %240 : vector<2x128xf32>
    %242 = math.exp %241 : vector<2x128xf32>
    %cst_56 = arith.constant 1.000000e+00 : f32
    %243 = vector.broadcast %cst_56 : f32 to vector<2x128xf32>
    %244 = arith.addf %243, %242 : vector<2x128xf32>
    %245 = arith.divf %243, %244 : vector<2x128xf32>
    %246 = vector.extract_strided_slice %233 {offsets = [0, 256], sizes = [2, 128], strides = [1, 1]} : vector<2x512xf32> to vector<2x128xf32>
    %247 = math.tanh %246 : vector<2x128xf32>
    %248 = vector.extract_strided_slice %233 {offsets = [0, 384], sizes = [2, 128], strides = [1, 1]} : vector<2x512xf32> to vector<2x128xf32>
    %249 = arith.negf %248 : vector<2x128xf32>
    %250 = math.exp %249 : vector<2x128xf32>
    %cst_57 = arith.constant 1.000000e+00 : f32
    %251 = vector.broadcast %cst_57 : f32 to vector<2x128xf32>
    %252 = arith.addf %251, %250 : vector<2x128xf32>
    %253 = arith.divf %251, %252 : vector<2x128xf32>
    %254 = arith.mulf %245, %224 : vector<2x128xf32>
    %255 = arith.mulf %239, %247 : vector<2x128xf32>
    %256 = arith.addf %254, %255 : vector<2x128xf32>
    %257 = math.tanh %256 : vector<2x128xf32>
    %258 = arith.mulf %253, %257 : vector<2x128xf32>
    %259 = vector.extract_strided_slice %258 {offsets = [0, 64], sizes = [2, 16], strides = [1, 1]} : vector<2x128xf32> to vector<2x16xf32>
    %c0_58 = arith.constant 0 : index
    %c0_59 = arith.constant 0 : index
    %260 = vector.load %arg4[%c0_58, %c0_59] : memref<128x512xf32, #tpu.memory_space<vmem>>, vector<128x512xf32>
    %cst_60 = arith.constant dense<0.000000e+00> : vector<2x512xf32>
    %261 = tpu.matmul %258, %260, %cst_60 {dimension_numbers = #tpu.dot_dimension_numbers<[1], [0], [0], [1], [0, 0, 1, 1], [], []>} : vector<2x128xf32>, vector<128x512xf32>, vector<2x512xf32> -> vector<2x512xf32>
    %262 = vector.broadcast %9 : vector<1x512xf32> to vector<2x512xf32>
    %263 = arith.addf %261, %262 : vector<2x512xf32>
    %264 = vector.extract_strided_slice %2 {offsets = [14, 0], sizes = [2, 512], strides = [1, 1]} : vector<16x512xf32> to vector<2x512xf32>
    %265 = arith.addf %263, %264 : vector<2x512xf32>
    %266 = vector.extract_strided_slice %265 {offsets = [0, 0], sizes = [2, 128], strides = [1, 1]} : vector<2x512xf32> to vector<2x128xf32>
    %267 = arith.negf %266 : vector<2x128xf32>
    %268 = math.exp %267 : vector<2x128xf32>
    %cst_61 = arith.constant 1.000000e+00 : f32
    %269 = vector.broadcast %cst_61 : f32 to vector<2x128xf32>
    %270 = arith.addf %269, %268 : vector<2x128xf32>
    %271 = arith.divf %269, %270 : vector<2x128xf32>
    %272 = vector.extract_strided_slice %265 {offsets = [0, 128], sizes = [2, 128], strides = [1, 1]} : vector<2x512xf32> to vector<2x128xf32>
    %273 = arith.negf %272 : vector<2x128xf32>
    %274 = math.exp %273 : vector<2x128xf32>
    %cst_62 = arith.constant 1.000000e+00 : f32
    %275 = vector.broadcast %cst_62 : f32 to vector<2x128xf32>
    %276 = arith.addf %275, %274 : vector<2x128xf32>
    %277 = arith.divf %275, %276 : vector<2x128xf32>
    %278 = vector.extract_strided_slice %265 {offsets = [0, 256], sizes = [2, 128], strides = [1, 1]} : vector<2x512xf32> to vector<2x128xf32>
    %279 = math.tanh %278 : vector<2x128xf32>
    %280 = vector.extract_strided_slice %265 {offsets = [0, 384], sizes = [2, 128], strides = [1, 1]} : vector<2x512xf32> to vector<2x128xf32>
    %281 = arith.negf %280 : vector<2x128xf32>
    %282 = math.exp %281 : vector<2x128xf32>
    %cst_63 = arith.constant 1.000000e+00 : f32
    %283 = vector.broadcast %cst_63 : f32 to vector<2x128xf32>
    %284 = arith.addf %283, %282 : vector<2x128xf32>
    %285 = arith.divf %283, %284 : vector<2x128xf32>
    %286 = arith.mulf %277, %256 : vector<2x128xf32>
    %287 = arith.mulf %271, %279 : vector<2x128xf32>
    %288 = arith.addf %286, %287 : vector<2x128xf32>
    %289 = math.tanh %288 : vector<2x128xf32>
    %290 = arith.mulf %285, %289 : vector<2x128xf32>
    %291 = vector.extract_strided_slice %290 {offsets = [0, 64], sizes = [2, 16], strides = [1, 1]} : vector<2x128xf32> to vector<2x16xf32>
    %c0_64 = arith.constant 0 : index
    %c0_65 = arith.constant 0 : index
    %292 = vector.load %arg4[%c0_64, %c0_65] : memref<128x512xf32, #tpu.memory_space<vmem>>, vector<128x512xf32>
    %cst_66 = arith.constant dense<0.000000e+00> : vector<2x512xf32>
    %293 = tpu.matmul %290, %292, %cst_66 {dimension_numbers = #tpu.dot_dimension_numbers<[1], [0], [0], [1], [0, 0, 1, 1], [], []>} : vector<2x128xf32>, vector<128x512xf32>, vector<2x512xf32> -> vector<2x512xf32>
    %294 = vector.broadcast %9 : vector<1x512xf32> to vector<2x512xf32>
    %295 = arith.addf %293, %294 : vector<2x512xf32>
    %296 = vector.extract_strided_slice %295 {offsets = [0, 0], sizes = [2, 128], strides = [1, 1]} : vector<2x512xf32> to vector<2x128xf32>
    %297 = arith.negf %296 : vector<2x128xf32>
    %298 = math.exp %297 : vector<2x128xf32>
    %cst_67 = arith.constant 1.000000e+00 : f32
    %299 = vector.broadcast %cst_67 : f32 to vector<2x128xf32>
    %300 = arith.addf %299, %298 : vector<2x128xf32>
    %301 = arith.divf %299, %300 : vector<2x128xf32>
    %302 = vector.extract_strided_slice %295 {offsets = [0, 128], sizes = [2, 128], strides = [1, 1]} : vector<2x512xf32> to vector<2x128xf32>
    %303 = arith.negf %302 : vector<2x128xf32>
    %304 = math.exp %303 : vector<2x128xf32>
    %cst_68 = arith.constant 1.000000e+00 : f32
    %305 = vector.broadcast %cst_68 : f32 to vector<2x128xf32>
    %306 = arith.addf %305, %304 : vector<2x128xf32>
    %307 = arith.divf %305, %306 : vector<2x128xf32>
    %308 = vector.extract_strided_slice %295 {offsets = [0, 256], sizes = [2, 128], strides = [1, 1]} : vector<2x512xf32> to vector<2x128xf32>
    %309 = math.tanh %308 : vector<2x128xf32>
    %310 = vector.extract_strided_slice %295 {offsets = [0, 384], sizes = [2, 128], strides = [1, 1]} : vector<2x512xf32> to vector<2x128xf32>
    %311 = arith.negf %310 : vector<2x128xf32>
    %312 = math.exp %311 : vector<2x128xf32>
    %cst_69 = arith.constant 1.000000e+00 : f32
    %313 = vector.broadcast %cst_69 : f32 to vector<2x128xf32>
    %314 = arith.addf %313, %312 : vector<2x128xf32>
    %315 = arith.divf %313, %314 : vector<2x128xf32>
    %316 = arith.mulf %307, %288 : vector<2x128xf32>
    %317 = arith.mulf %301, %309 : vector<2x128xf32>
    %318 = arith.addf %316, %317 : vector<2x128xf32>
    %319 = math.tanh %318 : vector<2x128xf32>
    %320 = arith.mulf %315, %319 : vector<2x128xf32>
    %321 = arith.ori %17, %22 : vector<1x128xi1>
    %322 = vector.shape_cast %321 : vector<1x128xi1> to vector<1x128xi1>
    %323 = vector.broadcast %322 : vector<1x128xi1> to vector<2x128xi1>
    %324 = arith.select %323, %318, %288 : vector<2x128xi1>, vector<2x128xf32>
    %325 = vector.shape_cast %321 : vector<1x128xi1> to vector<1x128xi1>
    %326 = vector.broadcast %325 : vector<1x128xi1> to vector<2x128xi1>
    %327 = arith.select %326, %320, %290 : vector<2x128xi1>, vector<2x128xf32>
    %328 = vector.extract_strided_slice %327 {offsets = [0, 64], sizes = [2, 16], strides = [1, 1]} : vector<2x128xf32> to vector<2x16xf32>
    %c0_70 = arith.constant 0 : index
    %c0_71 = arith.constant 0 : index
    %329 = vector.load %arg4[%c0_70, %c0_71] : memref<128x512xf32, #tpu.memory_space<vmem>>, vector<128x512xf32>
    %cst_72 = arith.constant dense<0.000000e+00> : vector<2x512xf32>
    %330 = tpu.matmul %327, %329, %cst_72 {dimension_numbers = #tpu.dot_dimension_numbers<[1], [0], [0], [1], [0, 0, 1, 1], [], []>} : vector<2x128xf32>, vector<128x512xf32>, vector<2x512xf32> -> vector<2x512xf32>
    %331 = vector.broadcast %9 : vector<1x512xf32> to vector<2x512xf32>
    %332 = arith.addf %330, %331 : vector<2x512xf32>
    %333 = vector.extract_strided_slice %332 {offsets = [0, 0], sizes = [2, 128], strides = [1, 1]} : vector<2x512xf32> to vector<2x128xf32>
    %334 = arith.negf %333 : vector<2x128xf32>
    %335 = math.exp %334 : vector<2x128xf32>
    %cst_73 = arith.constant 1.000000e+00 : f32
    %336 = vector.broadcast %cst_73 : f32 to vector<2x128xf32>
    %337 = arith.addf %336, %335 : vector<2x128xf32>
    %338 = arith.divf %336, %337 : vector<2x128xf32>
    %339 = vector.extract_strided_slice %332 {offsets = [0, 128], sizes = [2, 128], strides = [1, 1]} : vector<2x512xf32> to vector<2x128xf32>
    %340 = arith.negf %339 : vector<2x128xf32>
    %341 = math.exp %340 : vector<2x128xf32>
    %cst_74 = arith.constant 1.000000e+00 : f32
    %342 = vector.broadcast %cst_74 : f32 to vector<2x128xf32>
    %343 = arith.addf %342, %341 : vector<2x128xf32>
    %344 = arith.divf %342, %343 : vector<2x128xf32>
    %345 = vector.extract_strided_slice %332 {offsets = [0, 256], sizes = [2, 128], strides = [1, 1]} : vector<2x512xf32> to vector<2x128xf32>
    %346 = math.tanh %345 : vector<2x128xf32>
    %347 = vector.extract_strided_slice %332 {offsets = [0, 384], sizes = [2, 128], strides = [1, 1]} : vector<2x512xf32> to vector<2x128xf32>
    %348 = arith.negf %347 : vector<2x128xf32>
    %349 = math.exp %348 : vector<2x128xf32>
    %cst_75 = arith.constant 1.000000e+00 : f32
    %350 = vector.broadcast %cst_75 : f32 to vector<2x128xf32>
    %351 = arith.addf %350, %349 : vector<2x128xf32>
    %352 = arith.divf %350, %351 : vector<2x128xf32>
    %353 = arith.mulf %344, %324 : vector<2x128xf32>
    %354 = arith.mulf %338, %346 : vector<2x128xf32>
    %355 = arith.addf %353, %354 : vector<2x128xf32>
    %356 = math.tanh %355 : vector<2x128xf32>
    %357 = arith.mulf %352, %356 : vector<2x128xf32>
    %358 = vector.shape_cast %22 : vector<1x128xi1> to vector<1x128xi1>
    %359 = vector.broadcast %358 : vector<1x128xi1> to vector<2x128xi1>
    %360 = arith.select %359, %357, %327 : vector<2x128xi1>, vector<2x128xf32>
    %361 = vector.extract_strided_slice %360 {offsets = [0, 64], sizes = [2, 16], strides = [1, 1]} : vector<2x128xf32> to vector<2x16xf32>
    %362 = tpu.concatenate %131, %163, %195, %227, %259, %291, %328, %361 in 1 : vector<2x16xf32>, vector<2x16xf32>, vector<2x16xf32>, vector<2x16xf32>, vector<2x16xf32>, vector<2x16xf32>, vector<2x16xf32>, vector<2x16xf32> -> vector<2x128xf32>
    %363 = arith.addf %362, %8 : vector<2x128xf32>
    %c0_76 = arith.constant 0 : index
    %c0_77 = arith.constant 0 : index
    %364 = vector.load %arg8[%c0_76, %c0_77] : memref<2x128xf32, #tpu.memory_space<vmem>>, vector<2x128xf32>
    tpu.vector_store %arg8[%c0_76, %c0_77], %363 {strides = array<i32>} : memref<2x128xf32, #tpu.memory_space<vmem>>, vector<2x128xf32>,
    return
  }
  func.func @transform_0(%arg0: i32) -> (i32, i32) {
    %c0_i32 = arith.constant 0 : i32
    %c0_i32_0 = arith.constant 0 : i32
    %c0_i32_1 = arith.constant 0 : i32
    return %c0_i32, %c0_i32_0 : i32, i32
  }
  func.func @transform_1(%arg0: i32) -> (i32, i32) {
    %c0_i32 = arith.constant 0 : i32
    %c0_i32_0 = arith.constant 0 : i32
    %c0_i32_1 = arith.constant 0 : i32
    return %c0_i32, %c0_i32_0 : i32, i32
  }
  func.func @transform_2(%arg0: i32) -> (i32, i32) {
    %c0_i32 = arith.constant 0 : i32
    %c0_i32_0 = arith.constant 0 : i32
    %c0_i32_1 = arith.constant 0 : i32
    return %c0_i32, %c0_i32_0 : i32, i32
  }
  func.func @transform_3(%arg0: i32) -> (i32, i32) {
    %c0_i32 = arith.constant 0 : i32
    %c0_i32_0 = arith.constant 0 : i32
    %c0_i32_1 = arith.constant 0 : i32
    return %c0_i32, %c0_i32_0 : i32, i32
  }
  func.func @transform_4(%arg0: i32) -> (i32, i32) {
    %c0_i32 = arith.constant 0 : i32
    %c0_i32_0 = arith.constant 0 : i32
    %c0_i32_1 = arith.constant 0 : i32
    return %c0_i32, %c0_i32_0 : i32, i32
  }
  func.func @transform_5(%arg0: i32) -> (i32, i32) {
    %c0_i32 = arith.constant 0 : i32
    %c0_i32_0 = arith.constant 0 : i32
    %c0_i32_1 = arith.constant 0 : i32
    return %c0_i32, %c0_i32_0 : i32, i32
  }
  func.func @transform_6(%arg0: i32) -> (i32, i32) {
    %c0_i32 = arith.constant 0 : i32
    %c0_i32_0 = arith.constant 0 : i32
    %c0_i32_1 = arith.constant 0 : i32
    return %c0_i32, %c0_i32_0 : i32, i32
  }
  func.func @transform_7(%arg0: i32) -> (i32, i32) {
    %c0_i32 = arith.constant 0 : i32
    %c0_i32_0 = arith.constant 0 : i32
    %c0_i32_1 = arith.constant 0 : i32
    return %c0_i32, %c0_i32_0 : i32, i32
  }
}

</mosaic_0001>

<bundles_post_ra>
// kernel: tpu_custom_call.1
= control target key start
LH: loop header
LB: loop body
LE: loop exit
PB: predicated region body
PF: predicated region fallthrough
CT: control target
= control target key end

     0   :  { %12 = vsyncpa [#allocation3], 0  ;;  %s4093_s0 = inlined_call_operand.hbm [shape: f32[16,16], index: 0, kind: input, shape index: {}]   ;;  %s4094_s1 = inlined_call_operand.vmem [shape: f32[2,128], index: 1, kind: input, shape index: {}]   ;;  %s4095_s2 = inlined_call_operand.hbm [shape: f32[16,512], index: 2, kind: input, shape index: {}]   ;;  %s4096_s3 = inlined_call_operand.hbm [shape: f32[128,512], index: 3, kind: input, shape index: {}]   ;;  %s4097_s4 = inlined_call_operand.vmem [shape: f32[1,512], index: 4, kind: input, shape index: {}]   ;;  %s4098_s5 = inlined_call_operand.hbm [shape: f32[128,128], index: 5, kind: input, shape index: {}]   ;;  %s4099_s6 = inlined_call_operand.vmem [shape: f32[1,128], index: 6, kind: input, shape index: {}]   ;;  %s4100_s7 = inlined_call_operand.hbm [shape: f32[2,128], index: 7, kind: output, shape index: {}]  }
   0x1   :  { %13 = vsyncpa [#allocation6], 0 }
   0x2   :  { %14 = vsyncpa [#allocation9], 0 }
   0x3   :  { %15 = vsyncpa [#allocation4], 0  ;;  %s3324_s24 = smov [#allocation5]   ;;  %s3206_s28 = scalar_lea.hbm %s4095_s2, 1024 }
   0x4   :  { %s35_s25 = sshll.u32 %s3324_s24, 4  ;;  %p3207_p0 = scmp.ne.s32.totalorder %s4095_s2, %s3206_s28  ;;  %s36_s25 = int_to_ptr.vmem [resolvable:$true] %s35_s25 }
   0x5   :  { %p3210_p1 = scmp.lt.u32.totalorder %s3206_s28, %s4095_s2 }
   0x7   :  { %p3212_p2 = pnand %p3210_p1, %p3207_p0 }
   0x9   :  { %3215 = shalt.err (!%p3212_p2)
}
   0xa   :  { %s3216_s10 = scalar_lea.vmem %s36_s25, 1024  ;;  %p3221_p4 = scmp.lt.s32.totalorder %s36_s25, %s36_s25 }
   0xb   :  { %p3217_p3 = scmp.ne.s32.totalorder %s36_s25, %s3216_s10  ;;  %p3222_p5 = scmp.lt.s32.totalorder %s3216_s10, %s3216_s10 }
   0xd   :  { %p3223_p6 = por %p3222_p5, %p3221_p4 }
   0xf   :  { %p3224_p7 = pnand %p3223_p6, %p3217_p3 }
  0x11   :  { %3227 = shalt.err (!%p3224_p7)
}
  0x12   :  { %s3325_s11 = smov 512   ;;  %s3326_s12 = smov 32  }
  0x13   :  { %41 = dma.hbm_to_vmem [thread:$0]  %s4095_s2, 1024, %s36_s25, [#allocation6], %s3325_s11, %s3325_s11, %s3326_s12  }
  0x14   :  { %s3327_s15 = smov [#allocation2]   ;;  %s3228_s19 = scalar_lea.hbm %s4093_s0, 256 }
  0x15   :  { %s21_s16 = sshll.u32 %s3327_s15, 4  ;;  %p3229_p8 = scmp.ne.s32.totalorder %s4093_s0, %s3228_s19  ;;  %s22_s16 = int_to_ptr.vmem [resolvable:$true] %s21_s16 }
  0x16   :  { %p3232_p9 = scmp.lt.u32.totalorder %s3228_s19, %s4093_s0 }
  0x18   :  { %p3234_p10 = pnand %p3232_p9, %p3229_p8 }
  0x1a   :  { %3237 = shalt.err (!%p3234_p10)
}
  0x1b   :  { %s3238_s24 = scalar_lea.vmem %s22_s16, 256  ;;  %p3243_p12 = scmp.lt.s32.totalorder %s22_s16, %s22_s16 }
  0x1c   :  { %p3239_p11 = scmp.ne.s32.totalorder %s22_s16, %s3238_s24  ;;  %p3244_p13 = scmp.lt.s32.totalorder %s3238_s24, %s3238_s24 }
  0x1e   :  { %p3245_p0 = por %p3244_p13, %p3243_p12 }
  0x20   :  { %p3246_p1 = pnand %p3245_p0, %p3239_p11 }
  0x22   :  { %3249 = shalt.err (!%p3246_p1)
}
  0x23   :  { %s3328_s2 = smov 128   ;;  %s3329_s25 = smov 8  }
  0x24   :  { %27 = dma.hbm_to_vmem [thread:$0]  %s4093_s0, 256, %s22_s16, [#allocation3], %s3328_s2, %s3328_s2, %s3329_s25  }
  0x25   :  { %s3330_s28 = smov [#allocation7]   ;;  %s3331_s30 = smov [#allocation8]  }
  0x26   :  { %s47_s29 = sshll.u32 %s3330_s28, 4  ;;  %s61_s8 = sshll.u32 %s3331_s30, 4  ;;  %s48_s29 = int_to_ptr.vmem [resolvable:$true] %s47_s29  ;;  %s3412_s8 = int_to_ptr.vmem [resolvable:$true] %s61_s8 }
  0x27   :  { %s3250_s13 = scalar_lea.hbm %s4096_s3, 8192 }
  0x28   :  { %p3251_p2 = scmp.ne.s32.totalorder %s4096_s3, %s3250_s13  ;;  %p3254_p3 = scmp.lt.u32.totalorder %s3250_s13, %s4096_s3 }
  0x2a   :  { %p3256_p4 = pnand %p3254_p3, %p3251_p2 }
  0x2c   :  { %3259 = shalt.err (!%p3256_p4)
}
  0x2d   :  { %s3260_s0 = scalar_lea.vmem %s48_s29, 8192  ;;  %p3265_p6 = scmp.lt.s32.totalorder %s48_s29, %s48_s29 }
  0x2e   :  { %p3261_p5 = scmp.ne.s32.totalorder %s48_s29, %s3260_s0  ;;  %p3266_p7 = scmp.lt.s32.totalorder %s3260_s0, %s3260_s0 }
  0x30   :  { %p3267_p8 = por %p3266_p7, %p3265_p6 }
  0x32   :  { %p3268_p9 = pnand %p3267_p8, %p3261_p5 }
  0x34   :  { %3271 = shalt.err (!%p3268_p9)
}
  0x35   :  { %53 = dma.hbm_to_vmem [thread:$0]  %s4096_s3, 8192, %s48_s29, [#allocation6], %s3325_s11, %s3325_s11, %s3326_s12  }
  0x36   :  { %s3272_s22 = scalar_lea.hbm %s4098_s5, 2048 }
  0x37   :  { %p3273_p10 = scmp.ne.s32.totalorder %s4098_s5, %s3272_s22  ;;  %p3276_p11 = scmp.lt.u32.totalorder %s3272_s22, %s4098_s5 }
  0x39   :  { %p3278_p12 = pnand %p3276_p11, %p3273_p10 }
  0x3b   :  { %3281 = shalt.err (!%p3278_p12)
}
  0x3c   :  { %s3282_s28 = scalar_lea.vmem %s3412_s8, 2048  ;;  %p3287_p0 = scmp.lt.s32.totalorder %s3412_s8, %s3412_s8 }
  0x3d   :  { %p3283_p13 = scmp.ne.s32.totalorder %s3412_s8, %s3282_s28  ;;  %p3288_p1 = scmp.lt.s32.totalorder %s3282_s28, %s3282_s28 }
  0x3f   :  { %p3289_p2 = por %p3288_p1, %p3287_p0 }
  0x41   :  { %p3290_p3 = pnand %p3289_p2, %p3283_p13 }
  0x43   :  { %3293 = shalt.err (!%p3290_p3)
}
  0x44   :  { %67 = dma.hbm_to_vmem [thread:$0]  %s4098_s5, 2048, %s3412_s8, [#allocation9], %s3328_s2, %s3328_s2, %s3329_s25  }
  0x45   :  { %3316 = dma.done.wait [#allocation3], 256  }
  0x46   :  { %3317 = vsyncadd [#allocation3], 4294967040 }
  0x47   :  { %3318 = dma.done.wait [#allocation6], 9216  }
  0x48   :  { %3319 = vsyncadd [#allocation6], 4294958080 }
  0x49   :  { %3320 = dma.done.wait [#allocation9], 2048  }
  0x4a   :  { %3321 = vsyncadd [#allocation9], 4294965248  ;;  %v3332_v0 = vmov 0.0|0.0   ;;  %v4101_v1 = vmov 0.0   ;;  %vm3334_vm0 = vmmov 0   ;;  %v85_v2 = vld [vmem:[#allocation5 + $0x8] sm:$0xff] }
  0x4b   :  { %2364 = vmatprep.subr.bf16.mxu0 %v3332_v0  ;;  %163 = vmatprep.mubr.f32.mxu1 %v4101_v1  ;;  %v89_v3 = vld [vmem:[#allocation5 + $0x28] sm:$0xff]  ;;  %v254_v4 = vld [vmem:[#allocation8] sm:$0xff]  ;;  %v256_v11 = vld [vmem:[#allocation8 + $0x10] sm:$0xff]  ;;  %vm92_vm1 = vcmask 130048   ;;  %s3336_s29 = smov 80   ;;  %s3337_s30 = smov 96  }
  0x4c   :  { %2353 = vmatprep.mubr.msk.f32.mxu0 %vm3334_vm0, %v4101_v1  ;;  %v2356_v5 = vpack.c.bf16 %v89_v3, %v85_v2  ;;  %v255_v6 = vld [vmem:[#allocation8 + $0x8] sm:$0xff]  ;;  %v84_v7 = vld [vmem:[#allocation5] sm:$0xff]  ;;  %v257_v12 = vld [vmem:[#allocation8 + $0x18] sm:$0xff]  ;;  %s3338_s8 = smov 112   ;;  %s3339_s9 = smov 16   ;;  %vm2236_vm11 = vcmask 261120  }
  0x4d   :  { %v88_v8 = vld [vmem:[#allocation5 + $0x20] sm:$0xff]  ;;  %v2365_v9 = vpack.c.bf16 %v255_v6, %v254_v4  ;;  %v82_v13 = vld [vmem:[#allocation2] sm:$0xff]  ;;  %v87_v14 = vld [vmem:[#allocation5 + $0x18] sm:$0xff]  ;;  %v2368_v16 = vpack.c.bf16 %v257_v12, %v256_v11  ;;  %vm2238_vm12 = vcmask 392192   ;;  %vm2240_vm13 = vcmask 523264   ;;  %s3341_s14 = smov [#allocation10]  }
  0x4e   :  { %v2358_v10 = vpack.c.bf16 %v88_v8, %v84_v7  ;;  %2357 = vmatprep.subr.bf16.mxu1 %v2356_v5  ;;  %v91_v15 = vld [vmem:[#allocation5 + $0x38] sm:$0xff]  ;;  %v86_v18 = vld [vmem:[#allocation5 + $0x10] sm:$0xff]  ;;  %v258_v20 = vld [vmem:[#allocation8 + $0x20] sm:$0xff]  ;;  %vm2242_vm14 = vcmask 654336   ;;  %vm2244_vm15 = vcmask 785408   ;;  %vm2246_vm0 = vcmask 916480  }
  0x4f   :  { %2366 = vmatpush3.bf16.msra.mxu0 %v2365_v9  ;;  %v2360_v17 = vpack.c.bf16 %v91_v15, %v87_v14  ;;  %v90_v19 = vld [vmem:[#allocation5 + $0x30] sm:$0xff]  ;;  %v259_v22 = vld [vmem:[#allocation8 + $0x28] sm:$0xff]  ;;  %v83_v26 = vld [vmem:[#allocation2 + $0x8] sm:$0xff]  ;;  %s2256_s15 = sshll.u32 %s3341_s14, 4  ;;  %s2257_s15 = int_to_ptr.vmem [resolvable:$true] %s2256_s15 }
  0x50   :  { %2359 = vmatpush1.bf16.msra.mxu1 %v2358_v10  ;;  %2367 = vmatprep.subr.bf16.mxu0 %v3332_v0  ;;  %v2362_v21 = vpack.c.bf16 %v90_v19, %v86_v18  ;;  %v358_v23 = vld [vmem:[#allocation7 + $0x8] sm:$0xff]  ;;  %v2371_v27 = vpack.c.bf16 %v259_v22, %v258_v20  ;;  %v260_v28 = vld [vmem:[#allocation8 + $0x30] sm:$0xff]  ;;  %v261_v29 = vld [vmem:[#allocation8 + $0x38] sm:$0xff]  ;;  %s3294_s17 = scalar_lea.vmem %s2257_s15, 32  ;;  %p3299_p5 = scmp.lt.s32.totalorder %s2257_s15, %s2257_s15 }
  0x51   :  { %v362_v24 = vld [vmem:[#allocation7 + $0x28] sm:$0xff]  ;;  %2361 = vmatprep.subr.bf16.mxu1 %v2360_v17  ;;  %v357_v30 = vld [vmem:[#allocation7] sm:$0xff]  ;;  %v2374_v34 = vpack.c.bf16 %v261_v29, %v260_v28  ;;  %v264_v45 = vld [vmem:[#allocation8 + $0x50] sm:$0xff]  ;;  %p3295_p4 = scmp.ne.s32.totalorder %s2257_s15, %s3294_s17  ;;  %p3300_p6 = scmp.lt.s32.totalorder %s3294_s17, %s3294_s17 }
  0x52   :  { %v3453_v25 = vpack.c.bf16 %v362_v24, %v358_v23  ;;  %v361_v31 = vld [vmem:[#allocation7 + $0x20] sm:$0xff]  ;;  %v366_v32 = vld [vmem:[#allocation7 + $0x48] sm:$0xff]  ;;  %v265_v47 = vld [vmem:[#allocation8 + $0x58] sm:$0xff] }
  0x53   :  { %2267 = vmatmul.mubr.msk.f32.vlgmr.msra.gmra.mrb[0].mxu1 %vm92_vm1, %v82_v13  ;;  %2369 = vmatpush3.bf16.msra.mxu0 %v2368_v16  ;;  %v370_v33 = vld [vmem:[#allocation7 + $0x68] sm:$0xff]  ;;  %v3461_v35 = vpack.c.bf16 %v361_v31, %v357_v30  ;;  %v262_v36 = vld [vmem:[#allocation8 + $0x40] sm:$0xff]  ;;  %v2380_v52 = vpack.c.bf16 %v265_v47, %v264_v45  ;;  %v268_v63 = vld [vmem:[#allocation8 + $0x70] sm:$0xff]  ;;  %p3301_p7 = por %p3300_p6, %p3299_p5 }
  0x54   :  { %169 = vmatprep.mubr.f32.mxu1 %v4101_v1  ;;  %2370 = vmatprep.subr.bf16.mxu0 %v3332_v0  ;;  %v3464_v37 = vpack.c.bf16 %v370_v33, %v366_v32  ;;  %v263_v38 = vld [vmem:[#allocation8 + $0x48] sm:$0xff]  ;;  %v365_v39 = vld [vmem:[#allocation7 + $0x40] sm:$0xff]  ;;  %v269_v2 = vld [vmem:[#allocation8 + $0x78] sm:$0xff] }
  0x55   :  { %2363 = vmatpush1.bf16.msra.mxu1 %v2362_v21  ;;  %v369_v40 = vld [vmem:[#allocation7 + $0x60] sm:$0xff]  ;;  %v374_v41 = vld [vmem:[#allocation7 + $0x88] sm:$0xff]  ;;  %v2377_v43 = vpack.c.bf16 %v263_v38, %v262_v36  ;;  %v360_v8 = vld [vmem:[#allocation7 + $0x18] sm:$0xff]  ;;  %v2386_v10 = vpack.c.bf16 %v269_v2, %v268_v63  ;;  %p3302_p8 = pnand %p3301_p7, %p3295_p4 }
  0x56   :  { %2389 = vmatprep.subr.bf16.mxu1 %v3453_v25  ;;  %v378_v42 = vld [vmem:[#allocation7 + $0xa8] sm:$0xff]  ;;  %v3468_v44 = vpack.c.bf16 %v369_v40, %v365_v39  ;;  %v373_v48 = vld [vmem:[#allocation7 + $0x80] sm:$0xff]  ;;  %v364_v9 = vld [vmem:[#allocation7 + $0x38] sm:$0xff] }
  0x57   :  { %2268 = vmatmul.mubr.msk.f32.gmra.mrb[2].mxu1 %vm92_vm1, %v83_v26  ;;  %2372 = vmatpush3.bf16.msra.mxu0 %v2371_v27  ;;  %v3472_v46 = vpack.c.bf16 %v378_v42, %v374_v41  ;;  %v377_v49 = vld [vmem:[#allocation7 + $0xa0] sm:$0xff]  ;;  %v382_v50 = vld [vmem:[#allocation7 + $0xc8] sm:$0xff]  ;;  %v3498_v15 = vpack.c.bf16 %v364_v9, %v360_v8  ;;  %v359_v16 = vld [vmem:[#allocation7 + $0x10] sm:$0xff] }
  0x58   :  { %240 = vmatprep.mubr.f32.mxu1 %v4101_v1  ;;  %2373 = vmatprep.subr.bf16.mxu0 %v3332_v0  ;;  %v386_v51 = vld [vmem:[#allocation7 + $0xe8] sm:$0xff]  ;;  %v3477_v53 = vpack.c.bf16 %v377_v49, %v373_v48  ;;  %v266_v54 = vld [vmem:[#allocation8 + $0x60] sm:$0xff]  ;;  %v363_v17 = vld [vmem:[#allocation7 + $0x30] sm:$0xff] }
  0x59   :  { %v3481_v55 = vpack.c.bf16 %v386_v51, %v382_v50  ;;  %v267_v56 = vld [vmem:[#allocation8 + $0x68] sm:$0xff]  ;;  %v381_v57 = vld [vmem:[#allocation7 + $0xc0] sm:$0xff]  ;;  %v368_v20 = vld [vmem:[#allocation7 + $0x58] sm:$0xff]  ;;  %v3506_v23 = vpack.c.bf16 %v363_v17, %v359_v16 }
  0x5a   :  { %v385_v58 = vld [vmem:[#allocation7 + $0xe0] sm:$0xff]  ;;  %v390_v59 = vld [vmem:[#allocation7 + $0x108] sm:$0xff]  ;;  %v2383_v61 = vpack.c.bf16 %v267_v56, %v266_v54  ;;  %v372_v21 = vld [vmem:[#allocation7 + $0x78] sm:$0xff] }
  0x5b   :  { %2269 = vmatmul.mubr.msk.f32.vlgmr.msra.gmra.mrb[4].mxu1 %vm92_vm1, %v82_v13  ;;  %2375 = vmatpush3.bf16.msra.mxu0 %v2374_v34  ;;  %v394_v60 = vld [vmem:[#allocation7 + $0x128] sm:$0xff]  ;;  %v3485_v62 = vpack.c.bf16 %v385_v58, %v381_v57  ;;  %v389_v4 = vld [vmem:[#allocation7 + $0x100] sm:$0xff]  ;;  %v253_v22 = vld [vmem:[%s4094_s1] sm:$0x3]  ;;  %v3512_v28 = vpack.c.bf16 %v372_v21, %v368_v20 }
  0x5c   :  { %2391 = vmatpush1.bf16.msra.mxu1 %v3461_v35  ;;  %2376 = vmatprep.subr.bf16.mxu0 %v3332_v0  ;;  %v3489_v3 = vpack.c.bf16 %v394_v60, %v390_v59  ;;  %v393_v5 = vld [vmem:[#allocation7 + $0x120] sm:$0xff]  ;;  %v398_v6 = vld [vmem:[#allocation7 + $0x148] sm:$0xff]  ;;  %v367_v29 = vld [vmem:[#allocation7 + $0x50] sm:$0xff] }
  0x5d   :  { %2393 = vmatprep.subr.bf16.mxu1 %v3464_v37  ;;  %246 = vmatprep.mubr.f32.mxu1 %v4101_v1  ;;  %v402_v7 = vld [vmem:[#allocation7 + $0x168] sm:$0xff]  ;;  %v3492_v11 = vpack.c.bf16 %v393_v5, %v389_v4  ;;  %v397_v12 = vld [vmem:[#allocation7 + $0x140] sm:$0xff]  ;;  %v371_v30 = vld [vmem:[#allocation7 + $0x70] sm:$0xff] }
  0x5e   :  { %v401_v13 = vld [vmem:[#allocation7 + $0x160] sm:$0xff]  ;;  %v3496_v14 = vpack.c.bf16 %v402_v7, %v398_v6  ;;  %v406_v18 = vld [vmem:[#allocation7 + $0x188] sm:$0xff]  ;;  %v376_v33 = vld [vmem:[#allocation7 + $0x98] sm:$0xff]  ;;  %v3518_v38 = vpack.c.bf16 %v371_v30, %v367_v29 }
  0x5f   :  { %2270 = vmatmul.mubr.msk.f32.gmra.mrb[6].mxu1 %vm92_vm1, %v83_v26  ;;  %2378 = vmatpush3.bf16.msra.mxu0 %v2377_v43  ;;  %v410_v19 = vld [vmem:[#allocation7 + $0x1a8] sm:$0xff]  ;;  %v405_v24 = vld [vmem:[#allocation7 + $0x180] sm:$0xff]  ;;  %v380_v34 = vld [vmem:[#allocation7 + $0xb8] sm:$0xff] }
  0x60   :  { %2395 = vmatpush1.bf16.msra.mxu1 %v3468_v44  ;;  %2379 = vmatprep.subr.bf16.mxu0 %v3332_v0  ;;  %v409_v26 = vld [vmem:[#allocation7 + $0x1a0] sm:$0xff]  ;;  %v3510_v27 = vpack.c.bf16 %v410_v19, %v406_v18  ;;  %v414_v31 = vld [vmem:[#allocation7 + $0x1c8] sm:$0xff]  ;;  %v3524_v41 = vpack.c.bf16 %v380_v34, %v376_v33  ;;  %v375_v43 = vld [vmem:[#allocation7 + $0x90] sm:$0xff] }
  0x61   :  { %2397 = vmatprep.subr.bf16.mxu1 %v3472_v46  ;;  %506 = vmatprep.mubr.f32.mxu1 %v4101_v1  ;;  %v418_v32 = vld [vmem:[#allocation7 + $0x1e8] sm:$0xff]  ;;  %v3516_v36 = vpack.c.bf16 %v409_v26, %v405_v24  ;;  %v413_v39 = vld [vmem:[#allocation7 + $0x1c0] sm:$0xff]  ;;  %v379_v45 = vld [vmem:[#allocation7 + $0xb0] sm:$0xff] }
  0x62   :  { %v3522_v40 = vpack.c.bf16 %v418_v32, %v414_v31  ;;  %v417_v42 = vld [vmem:[#allocation7 + $0x1e0] sm:$0xff]  ;;  %v384_v47 = vld [vmem:[#allocation7 + $0xd8] sm:$0xff]  ;;  %v3531_v50 = vpack.c.bf16 %v379_v45, %v375_v43  ;;  %v387_v54 = vld [vmem:[#allocation7 + $0xf0] sm:$0xff] }
  0x63   :  { %2381 = vmatpush3.bf16.msra.mxu0 %v2380_v52  ;;  %v388_v48 = vld [vmem:[#allocation7 + $0xf8] sm:$0xff]  ;;  %v3529_v49 = vpack.c.bf16 %v417_v42, %v413_v39  ;;  %v383_v52 = vld [vmem:[#allocation7 + $0xd0] sm:$0xff]  ;;  %v348_v42 = vlaneseq }
  0x64   :  { %2399 = vmatpush1.bf16.msra.mxu1 %v3477_v53  ;;  %2382 = vmatprep.subr.bf16.mxu0 %v3332_v0  ;;  %v3535_v51 = vpack.c.bf16 %v388_v48, %v384_v47  ;;  %v392_v56 = vld [vmem:[#allocation7 + $0x118] sm:$0xff]  ;;  %v3539_v58 = vpack.c.bf16 %v387_v54, %v383_v52  ;;  %v391_v60 = vld [vmem:[#allocation7 + $0x110] sm:$0xff] }
  0x65   :  { %2401 = vmatprep.subr.bf16.mxu1 %v3481_v55  ;;  %v396_v57 = vld [vmem:[#allocation7 + $0x138] sm:$0xff]  ;;  %v399_v6 = vld [vmem:[#allocation7 + $0x150] sm:$0xff]  ;;  %v423_v47 = vshrl.u32 %v348_v42, 7 }
  0x66   :  { %v3542_v59 = vpack.c.bf16 %v396_v57, %v392_v56  ;;  %v400_v63 = vld [vmem:[#allocation7 + $0x158] sm:$0xff]  ;;  %v403_v7 = vld [vmem:[#allocation7 + $0x170] sm:$0xff] }
  0x67   :  { %2384 = vmatpush3.bf16.msra.mxu0 %v2383_v61  ;;  %v395_v61 = vld [vmem:[#allocation7 + $0x130] sm:$0xff]  ;;  %v404_v2 = vld [vmem:[#allocation7 + $0x178] sm:$0xff]  ;;  %v424_v48 = vsub.s32 0, %v423_v47  ;;  %v428_v54 = vsub.s32 1, %v423_v47 }
  0x68   :  { %2403 = vmatpush1.bf16.msra.mxu1 %v3485_v62  ;;  %2385 = vmatprep.subr.bf16.mxu0 %v3332_v0  ;;  %v3504_v0 = vpack.c.bf16 %v401_v13, %v397_v12  ;;  %v3547_v4 = vpack.c.bf16 %v395_v61, %v391_v60  ;;  %v3551_v5 = vpack.c.bf16 %v404_v2, %v400_v63  ;;  %v408_v8 = vld [vmem:[#allocation7 + $0x198] sm:$0xff]  ;;  %v407_v13 = vld [vmem:[#allocation7 + $0x190] sm:$0xff] }
  0x69   :  { %2405 = vmatprep.subr.bf16.mxu1 %v3489_v3  ;;  %v412_v9 = vld [vmem:[#allocation7 + $0x1b8] sm:$0xff]  ;;  %v411_v16 = vld [vmem:[#allocation7 + $0x1b0] sm:$0xff] }
  0x6a   :  { %v3560_v12 = vpack.c.bf16 %v412_v9, %v408_v8  ;;  %v416_v17 = vld [vmem:[#allocation7 + $0x1d8] sm:$0xff]  ;;  %v3564_v19 = vpack.c.bf16 %v411_v16, %v407_v13  ;;  %v415_v21 = vld [vmem:[#allocation7 + $0x1d0] sm:$0xff]  ;;  %v432_v13 = vsub.s32 2, %v423_v47  ;;  %v436_v16 = vsub.s32 3, %v423_v47 }
  0x6b   :  { %2387 = vmatpush3.bf16.msra.mxu0 %v2386_v10  ;;  %v3556_v10 = vpack.c.bf16 %v403_v7, %v399_v6  ;;  %v420_v18 = vld [vmem:[#allocation7 + $0x1f8] sm:$0xff]  ;;  %v347_v52 = vld [vmem:[%s4097_s4] sm:$0xf]  ;;  %s3335_s4 = smov 64  }
  0x6c   :  { %2407 = vmatpush1.bf16.msra.mxu1 %v3492_v11  ;;  %2421 = vmatprep.subr.bf16.mxu0 %v3498_v15  ;;  %v3568_v20 = vpack.c.bf16 %v420_v18, %v416_v17  ;;  %v3626_v56 = vrot.slane %v347_v52, %v424_v48  ;;  %v3628_v57 = vrot.slane %v347_v52, %v428_v54 }
  0x6d   :  { %2409 = vmatprep.subr.bf16.mxu1 %v3496_v14  ;;  %v3634_v18 = vrot.slane %v347_v52, %v432_v13 }
  0x6e   :  { %2354 = vmatmul.mubr.f32.vlgmr.msra.gmra.mrb[0].mxu0 %v253_v22  ;;  %v419_v22 = vld [vmem:[#allocation7 + $0x1f0] sm:$0xff] }
  0x6f   :  { %2423 = vmatpush1.bf16.msra.mxu0 %v3506_v23  ;;  %577 = vmatprep.mubr.f32.mxu0 %v4101_v1  ;;  %v3572_v24 = vpack.c.bf16 %v419_v22, %v415_v21  ;;  %v3636_v22 = vrot.slane %v347_v52, %v436_v16 }
  0x70   :  { %2411 = vmatpush1.bf16.msra.mxu1 %v3504_v0  ;;  %2425 = vmatprep.subr.bf16.mxu0 %v3512_v28 }
  0x71   :  { %2413 = vmatprep.subr.bf16.mxu1 %v3510_v27  ;;  %4119 = vst [vmem:[#allocation21_spill] sm:$0xff] %v3636_v22 }
  0x73   :  { %2427 = vmatpush1.bf16.msra.mxu0 %v3518_v38 }
  0x74   :  { %2415 = vmatpush1.bf16.msra.mxu1 %v3516_v36  ;;  %2429 = vmatprep.subr.bf16.mxu0 %v3524_v41 }
  0x75   :  { %2417 = vmatprep.subr.bf16.mxu1 %v3522_v40 }
  0x77   :  { %2431 = vmatpush1.bf16.msra.mxu0 %v3531_v50 }
  0x78   :  { %2419 = vmatpush1.bf16.msra.mxu1 %v3529_v49  ;;  %2433 = vmatprep.subr.bf16.mxu0 %v3535_v51 }
  0x79   :  { %2453 = vmatprep.subr.bf16.mxu1 %v3453_v25 }
  0x7b   :  { %507 = vmatmul.mubr.f32.vlgmr.msra.gmra.mrb[8].mxu1 %v4101_v1  ;;  %2435 = vmatpush1.bf16.msra.mxu0 %v3539_v58 }
  0x7c   :  { %2455 = vmatpush1.bf16.msra.mxu1 %v3461_v35  ;;  %2437 = vmatprep.subr.bf16.mxu0 %v3542_v59 }
  0x7d   :  { %2457 = vmatprep.subr.bf16.mxu1 %v3464_v37  ;;  %680 = vmatprep.mubr.f32.mxu1 %v4101_v1 }
  0x7f   :  { %2439 = vmatpush1.bf16.msra.mxu0 %v3547_v4 }
  0x80   :  { %2459 = vmatpush1.bf16.msra.mxu1 %v3468_v44  ;;  %2441 = vmatprep.subr.bf16.mxu0 %v3551_v5 }
  0x81   :  { %2461 = vmatprep.subr.bf16.mxu1 %v3472_v46 }
  0x83   :  { %2443 = vmatpush1.bf16.msra.mxu0 %v3556_v10 }
  0x84   :  { %2463 = vmatpush1.bf16.msra.mxu1 %v3477_v53  ;;  %2445 = vmatprep.subr.bf16.mxu0 %v3560_v12 }
  0x85   :  { %2465 = vmatprep.subr.bf16.mxu1 %v3481_v55 }
  0x87   :  { %2447 = vmatpush1.bf16.msra.mxu0 %v3564_v19 }
  0x88   :  { %2467 = vmatpush1.bf16.msra.mxu1 %v3485_v62  ;;  %2449 = vmatprep.subr.bf16.mxu0 %v3568_v20 }
  0x89   :  { %2469 = vmatprep.subr.bf16.mxu1 %v3489_v3 }
  0x8b   :  { %2451 = vmatpush1.bf16.msra.mxu0 %v3572_v24 }
  0x8c   :  { %2471 = vmatpush1.bf16.msra.mxu1 %v3492_v11  ;;  %2485 = vmatprep.subr.bf16.mxu0 %v3498_v15 }
  0x8d   :  { %2473 = vmatprep.subr.bf16.mxu1 %v3496_v14 }
  0x8e   :  { %578 = vmatmul.mubr.f32.vlgmr.msra.gmra.mrb[2].mxu0 %v4101_v1 }
  0x8f   :  { %2487 = vmatpush1.bf16.msra.mxu0 %v3506_v23  ;;  %751 = vmatprep.mubr.f32.mxu0 %v4101_v1 }
  0x90   :  { %2475 = vmatpush1.bf16.msra.mxu1 %v3504_v0  ;;  %2489 = vmatprep.subr.bf16.mxu0 %v3512_v28 }
  0x91   :  { %2477 = vmatprep.subr.bf16.mxu1 %v3510_v27 }
  0x93   :  { %2491 = vmatpush1.bf16.msra.mxu0 %v3518_v38 }
  0x94   :  { %2479 = vmatpush1.bf16.msra.mxu1 %v3516_v36  ;;  %2493 = vmatprep.subr.bf16.mxu0 %v3524_v41 }
  0x95   :  { %2481 = vmatprep.subr.bf16.mxu1 %v3522_v40 }
  0x97   :  { %2495 = vmatpush1.bf16.msra.mxu0 %v3531_v50 }
  0x98   :  { %2483 = vmatpush1.bf16.msra.mxu1 %v3529_v49  ;;  %2497 = vmatprep.subr.bf16.mxu0 %v3535_v51 }
  0x99   :  { %2517 = vmatprep.subr.bf16.mxu1 %v3453_v25 }
  0x9b   :  { %2499 = vmatpush1.bf16.msra.mxu0 %v3539_v58 }
  0x9c   :  { %2501 = vmatprep.subr.bf16.mxu0 %v3542_v59 }
  0x9f   :  { %2503 = vmatpush1.bf16.msra.mxu0 %v3547_v4 }
  0xa0   :  { %2505 = vmatprep.subr.bf16.mxu0 %v3551_v5 }
  0xa3   :  { %2507 = vmatpush1.bf16.msra.mxu0 %v3556_v10 }
  0xa4   :  { %2509 = vmatprep.subr.bf16.mxu0 %v3560_v12 }
  0xa7   :  { %2511 = vmatpush1.bf16.msra.mxu0 %v3564_v19 }
  0xa8   :  { %2513 = vmatprep.subr.bf16.mxu0 %v3568_v20 }
  0xab   :  { %2515 = vmatpush1.bf16.msra.mxu0 %v3572_v24 }
  0xac   :  { %2549 = vmatprep.subr.bf16.mxu0 %v3498_v15 }
 0x126   :  { %v3605_v26 = vpop.f32.mrb[0].mxu1 }
 0x127   :  { %v3607_v29 = vpop.f32.mrb[1].mxu1 }
 0x12a   :  { %v3609_v30 = vpop.f32.mrb[2].mxu1 }
 0x12b   :  { %4113 = vst [vmem:[#allocation15_spill] sm:$0xff] %v3609_v30  ;;  %v3611_v31 = vpop.f32.mrb[3].mxu1 }
 0x12c   :  { %4114 = vst [vmem:[#allocation16_spill] sm:$0xff] %v3611_v31 }
 0x12e   :  { %v3613_v32 = vpop.f32.mrb[4].mxu1 }
 0x12f   :  { %v3615_v33 = vpop.f32.mrb[5].mxu1 }
 0x130   :  { %4115 = vst [vmem:[#allocation17_spill] sm:$0xff] %v3615_v33 }
 0x132   :  { %v3617_v34 = vpop.f32.mrb[6].mxu1 }
 0x133   :  { %4116 = vst [vmem:[#allocation18_spill] sm:$0xff] %v3617_v34  ;;  %v3619_v39 = vpop.f32.mrb[7].mxu1 }
 0x134   :  { %4117 = vst [vmem:[#allocation19_spill] sm:$0xff] %v3619_v39 }
 0x141   :  { %v3621_v43 = vpop.f32.mrb[0].mxu0 }
 0x142   :  { %4118 = vst [vmem:[#allocation20_spill] sm:$0xff] %v3621_v43  ;;  %v2355_v45 = vpop.f32.mrb[1].mxu0 }
 0x14e   :  { %v508_v60 = vpop.f32.mrb[8].mxu1 }
 0x14f   :  { %v509_v61 = vadd.f32 %v508_v60, %v3626_v56  ;;  %v510_v63 = vpop.f32.mrb[9].mxu1 }
 0x150   :  { %v511_v2 = vadd.f32 %v510_v63, %v3628_v57 }
 0x151   :  { %v584_v6 = vadd.f32 %v509_v61, %v3605_v26 }
 0x152   :  { %v585_v7 = vadd.f32 %v511_v2, %v3607_v29 }
 0x153   :  { %v2272_v8 = vmul.f32 -1.442695, %v584_v6 }
 0x154   :  { %v2273_v9 = vmul.f32 -1.442695, %v585_v7 }
 0x155   :  { %3046 = vpow2.f32 %v2272_v8 }
 0x156   :  { %3048 = vpow2.f32 %v2273_v9 }
 0x15f   :  { %v3047_v17 = vpop.eup %3046 }
 0x160   :  { %v3049_v21 = vpop.eup %3048  ;;  %v591_v48 = vadd.f32 1.0, %v3047_v17 }
 0x161   :  { %v597_v45 = vadd.f32 1.0, %v3049_v21  ;;  %v579_v54 = vpop.f32.mrb[2].mxu0 }
 0x162   :  { %v580_v60 = vadd.f32 %v579_v54, %v3634_v18  ;;  %v581_v61 = vpop.f32.mrb[3].mxu0 }
 0x163   :  { %v582_v63 = vadd.f32 %v581_v61, %v3636_v22  ;;  %3050 = vrcp.f32 %v597_v45  ;;  %v3645_v45 = vand.u32 127, %v348_v42 }
 0x164   :  { %v586_v2 = vadd.f32 %v580_v60, %v3613_v32  ;;  %3052 = vrcp.f32 %v591_v48 }
 0x165   :  { %v587_v47 = vadd.f32 %v582_v63, %v3615_v33  ;;  %4120 = vst [vmem:[#allocation22_spill] sm:$0xff] %v3645_v45  ;;  %vm350_vm2 = vcmp.lt.s32.totalorder %v3645_v45, 32  ;;  %vm351_vm3 = vcmp.ge.s32.totalorder %v3645_v45, 32  ;;  %vm352_vm4 = vcmp.lt.s32.totalorder %v3645_v45, 64 }
 0x166   :  { %3054 = vtanh.f32 %v586_v2  ;;  %v762_v2 = vrot.slane %v3605_v26, 2  ;;  %vm3700_vm5 = vmand %vm351_vm3, %vm352_vm4 }
 0x167   :  { %v2274_v6 = vmul.f32 -1.442695, %v587_v47  ;;  %vm3714_vm6 = vmor %vm350_vm2, %vm3700_vm5 }
 0x169   :  { %3056 = vpow2.f32 %v2274_v6  ;;  %v764_v6 = vrot.slane %v3613_v32, 2 }
 0x16d   :  { %v3051_v7 = vpop.eup %3050 }
 0x16e   :  { %v3053_v52 = vpop.eup %3052  ;;  %v607_v9 = vmul.f32 0.0, %v3051_v7 }
 0x170   :  { %v3055_v8 = vpop.eup %3054 }
 0x171   :  { %v608_v13 = vmul.f32 %v3055_v8, %v3053_v52 }
 0x173   :  { %v3057_v16 = vpop.eup %3056  ;;  %v3642_v17 = vadd.f32 %v608_v13, %v607_v9  ;;  %v763_v9 = vrot.slane %v3607_v29, 2 }
 0x174   :  { %v604_v21 = vadd.f32 1.0, %v3057_v16  ;;  %v765_v16 = vrot.slane %v3615_v33, 2 }
 0x175   :  { %3058 = vtanh.f32 %v3642_v17 }
 0x176   :  { %3060 = vrcp.f32 %v604_v21 }
 0x17f   :  { %v3059_v48 = vpop.eup %3058 }
 0x180   :  { %v3061_v54 = vpop.eup %3060 }
 0x181   :  { %v3647_v60 = vmul.f32 %v3061_v54, %v3059_v48 }
 0x183   :  { %2275 = vmatmul.mubr.msk.f32.vlgmr.msra.gmra.mrb[10].mxu1 %vm350_vm2, %v3647_v60  ;;  %2276 = vmatmul.mubr.msk.f32.vlgmr.msra.gmra.mrb[4].mxu0 %vm350_vm2, %v3647_v60 }
 0x184   :  { %2519 = vmatpush1.bf16.msra.mxu1 %v3461_v35  ;;  %2551 = vmatpush1.bf16.msra.mxu0 %v3506_v23 }
 0x185   :  { %2521 = vmatprep.subr.bf16.mxu1 %v3464_v37  ;;  %2553 = vmatprep.subr.bf16.mxu0 %v3512_v28 }
 0x186   :  { %867 = vmatprep.mubr.f32.mxu1 %v4101_v1  ;;  %938 = vmatprep.mubr.f32.mxu0 %v4101_v1 }
 0x188   :  { %2523 = vmatpush1.bf16.msra.mxu1 %v3468_v44  ;;  %2555 = vmatpush1.bf16.msra.mxu0 %v3518_v38 }
 0x189   :  { %2525 = vmatprep.subr.bf16.mxu1 %v3472_v46  ;;  %2557 = vmatprep.subr.bf16.mxu0 %v3524_v41 }
 0x18c   :  { %2527 = vmatpush1.bf16.msra.mxu1 %v3477_v53  ;;  %2559 = vmatpush1.bf16.msra.mxu0 %v3531_v50 }
 0x18d   :  { %2529 = vmatprep.subr.bf16.mxu1 %v3481_v55  ;;  %2561 = vmatprep.subr.bf16.mxu0 %v3535_v51 }
 0x190   :  { %2531 = vmatpush1.bf16.msra.mxu1 %v3485_v62  ;;  %2563 = vmatpush1.bf16.msra.mxu0 %v3539_v58 }
 0x191   :  { %2533 = vmatprep.subr.bf16.mxu1 %v3489_v3  ;;  %2565 = vmatprep.subr.bf16.mxu0 %v3542_v59 }
 0x194   :  { %2535 = vmatpush1.bf16.msra.mxu1 %v3492_v11  ;;  %2567 = vmatpush1.bf16.msra.mxu0 %v3547_v4 }
 0x195   :  { %2537 = vmatprep.subr.bf16.mxu1 %v3496_v14  ;;  %2569 = vmatprep.subr.bf16.mxu0 %v3551_v5 }
 0x198   :  { %2539 = vmatpush1.bf16.msra.mxu1 %v3504_v0  ;;  %2571 = vmatpush1.bf16.msra.mxu0 %v3556_v10 }
 0x199   :  { %2541 = vmatprep.subr.bf16.mxu1 %v3510_v27  ;;  %2573 = vmatprep.subr.bf16.mxu0 %v3560_v12 }
 0x19c   :  { %2543 = vmatpush1.bf16.msra.mxu1 %v3516_v36  ;;  %2575 = vmatpush1.bf16.msra.mxu0 %v3564_v19 }
 0x19d   :  { %2545 = vmatprep.subr.bf16.mxu1 %v3522_v40  ;;  %2577 = vmatprep.subr.bf16.mxu0 %v3568_v20 }
 0x1a0   :  { %2547 = vmatpush1.bf16.msra.mxu1 %v3529_v49  ;;  %2579 = vmatpush1.bf16.msra.mxu0 %v3572_v24 }
 0x1a1   :  { %2581 = vmatprep.subr.bf16.mxu1 %v3453_v25  ;;  %2613 = vmatprep.subr.bf16.mxu0 %v3498_v15 }
 0x256   :  { %v682_v42 = vpop.f32.mrb[10].mxu1  ;;  %v753_v61 = vpop.f32.mrb[4].mxu0 }
 0x257   :  { %v683_v63 = vadd.f32 %v682_v42, %v3626_v56  ;;  %v754_v47 = vadd.f32 %v753_v61, %v3634_v18  ;;  %v684_v7 = vpop.f32.mrb[11].mxu1  ;;  %v755_v52 = vpop.f32.mrb[5].mxu0 }
 0x258   :  { %v685_v8 = vadd.f32 %v684_v7, %v3628_v57  ;;  %v756_v13 = vadd.f32 %v755_v52, %v3636_v22 }
 0x259   :  { %v770_v21 = vadd.f32 %v762_v2, %v683_v63  ;;  %v772_v48 = vadd.f32 %v764_v6, %v754_v47  ;;  %v4121_v6 = vmov 0 }
 0x25a   :  { %v771_v54 = vadd.f32 %v763_v9, %v685_v8  ;;  %v773_v42 = vadd.f32 %v765_v16, %v756_v13  ;;  %v4122_v6 = vsel %vm3700_vm5, 4294967295, %v4121_v6 }
 0x25b   :  { %v2277_v1 = vmul.f32 -1.442695, %v770_v21  ;;  %4123 = vst [vmem:[#allocation23_spill] sm:$0xff] %v4122_v6  ;;  %v615_v21 = vsel %vm350_vm2, %v3647_v60, 0.0 }
 0x25c   :  { %v2278_v43 = vmul.f32 -1.442695, %v771_v54  ;;  %v2279_v61 = vmul.f32 -1.442695, %v773_v42  ;;  %v4126_v54 = vmov 0.0  }
 0x25d   :  { %3062 = vpow2.f32 %v2277_v1 }
 0x25e   :  { %3064 = vpow2.f32 %v2278_v43 }
 0x25f   :  { %3066 = vpow2.f32 %v2279_v61 }
 0x260   :  { %3068 = vtanh.f32 %v772_v48 }
 0x267   :  { %v3063_v39 = vpop.eup %3062 }
 0x268   :  { %v3065_v31 = vpop.eup %3064  ;;  %v777_v34 = vadd.f32 1.0, %v3063_v39 }
 0x269   :  { %v783_v7 = vadd.f32 1.0, %v3065_v31  ;;  %v3067_v63 = vpop.eup %3066  ;;  %v3707_v31 = vsel %vm350_vm2, %v3642_v17, 0.0 }
 0x26a   :  { %3070 = vrcp.f32 %v777_v34  ;;  %v3069_v2 = vpop.eup %3068  ;;  %v790_v52 = vadd.f32 1.0, %v3067_v63 }
 0x26b   :  { %3072 = vrcp.f32 %v783_v7  ;;  %v945_v7 = vrot.slane %v3605_v26, 4 }
 0x26c   :  { %3074 = vrcp.f32 %v790_v52  ;;  %v946_v52 = vrot.slane %v3607_v29, 4 }
 0x274   :  { %v3071_v47 = vpop.eup %3070 }
 0x275   :  { %v3073_v1 = vpop.eup %3072  ;;  %v794_v43 = vmul.f32 %v3071_v47, %v3069_v2  ;;  %v947_v2 = vrot.slane %v3613_v32, 4 }
 0x276   :  { %v793_v34 = vmul.f32 %v3073_v1, %v3707_v31  ;;  %v3075_v9 = vpop.eup %3074 }
 0x278   :  { %v3718_v8 = vadd.f32 %v794_v43, %v793_v34 }
 0x27a   :  { %3076 = vtanh.f32 %v3718_v8 }
 0x284   :  { %v3077_v13 = vpop.eup %3076 }
 0x285   :  { %v797_v16 = vmul.f32 %v3077_v13, %v3075_v9  ;;  %v948_v9 = vrot.slane %v3615_v33, 4 }
 0x287   :  { %v802_v48 = vsel %vm3714_vm6, %v797_v16, %v615_v21 }
 0x288   :  { %868 = vmatmul.mubr.f32.vlgmr.msra.gmra.mrb[12].mxu1 %v802_v48  ;;  %939 = vmatmul.mubr.f32.vlgmr.msra.gmra.mrb[6].mxu0 %v802_v48 }
 0x289   :  { %2583 = vmatpush1.bf16.msra.mxu1 %v3461_v35  ;;  %2615 = vmatpush1.bf16.msra.mxu0 %v3506_v23 }
 0x28a   :  { %2585 = vmatprep.subr.bf16.mxu1 %v3464_v37  ;;  %2617 = vmatprep.subr.bf16.mxu0 %v3512_v28 }
 0x28b   :  { %1045 = vmatprep.mubr.f32.mxu1 %v4126_v54  ;;  %1116 = vmatprep.mubr.f32.mxu0 %v4126_v54 }
 0x28d   :  { %2587 = vmatpush1.bf16.msra.mxu1 %v3468_v44  ;;  %2619 = vmatpush1.bf16.msra.mxu0 %v3518_v38 }
 0x28e   :  { %2589 = vmatprep.subr.bf16.mxu1 %v3472_v46  ;;  %2621 = vmatprep.subr.bf16.mxu0 %v3524_v41 }
 0x291   :  { %2591 = vmatpush1.bf16.msra.mxu1 %v3477_v53  ;;  %2623 = vmatpush1.bf16.msra.mxu0 %v3531_v50 }
 0x292   :  { %2593 = vmatprep.subr.bf16.mxu1 %v3481_v55  ;;  %2625 = vmatprep.subr.bf16.mxu0 %v3535_v51 }
 0x295   :  { %2595 = vmatpush1.bf16.msra.mxu1 %v3485_v62  ;;  %2627 = vmatpush1.bf16.msra.mxu0 %v3539_v58 }
 0x296   :  { %2597 = vmatprep.subr.bf16.mxu1 %v3489_v3  ;;  %2629 = vmatprep.subr.bf16.mxu0 %v3542_v59 }
 0x299   :  { %2599 = vmatpush1.bf16.msra.mxu1 %v3492_v11  ;;  %2631 = vmatpush1.bf16.msra.mxu0 %v3547_v4 }
 0x29a   :  { %2601 = vmatprep.subr.bf16.mxu1 %v3496_v14  ;;  %2633 = vmatprep.subr.bf16.mxu0 %v3551_v5 }
 0x29d   :  { %2603 = vmatpush1.bf16.msra.mxu1 %v3504_v0  ;;  %2635 = vmatpush1.bf16.msra.mxu0 %v3556_v10 }
 0x29e   :  { %2605 = vmatprep.subr.bf16.mxu1 %v3510_v27  ;;  %2637 = vmatprep.subr.bf16.mxu0 %v3560_v12 }
 0x2a1   :  { %2607 = vmatpush1.bf16.msra.mxu1 %v3516_v36  ;;  %2639 = vmatpush1.bf16.msra.mxu0 %v3564_v19 }
 0x2a2   :  { %2609 = vmatprep.subr.bf16.mxu1 %v3522_v40  ;;  %2641 = vmatprep.subr.bf16.mxu0 %v3568_v20 }
 0x2a5   :  { %2611 = vmatpush1.bf16.msra.mxu1 %v3529_v49  ;;  %2643 = vmatpush1.bf16.msra.mxu0 %v3572_v24 }
 0x2a6   :  { %2645 = vmatprep.subr.bf16.mxu1 %v3453_v25  ;;  %2677 = vmatprep.subr.bf16.mxu0 %v3498_v15 }
 0x35b   :  { %v869_v60 = vpop.f32.mrb[12].mxu1  ;;  %v940_v42 = vpop.f32.mrb[6].mxu0 }
 0x35c   :  { %v870_v61 = vadd.f32 %v869_v60, %v3626_v56  ;;  %v941_v63 = vadd.f32 %v940_v42, %v3634_v18  ;;  %v871_v47 = vpop.f32.mrb[13].mxu1  ;;  %v942_v1 = vpop.f32.mrb[7].mxu0 }
 0x35d   :  { %v872_v43 = vadd.f32 %v871_v47, %v3628_v57  ;;  %v943_v34 = vadd.f32 %v942_v1, %v3636_v22 }
 0x35e   :  { %v953_v13 = vadd.f32 %v945_v7, %v870_v61  ;;  %v955_v16 = vadd.f32 %v947_v2, %v941_v63 }
 0x35f   :  { %v954_v21 = vadd.f32 %v946_v52, %v872_v43  ;;  %v956_v48 = vadd.f32 %v948_v9, %v943_v34  ;;  %v1125_v34 = vrot.slane %v3613_v32, 6 }
 0x360   :  { %v2280_v60 = vmul.f32 -1.442695, %v953_v13  ;;  %v1124_v13 = vrot.slane %v3607_v29, 6 }
 0x361   :  { %v2281_v17 = vmul.f32 -1.442695, %v954_v21  ;;  %v2282_v42 = vmul.f32 -1.442695, %v956_v48  ;;  %v4128_v48 = vld [vmem:[#allocation21_spill] sm:$0xff] }
 0x362   :  { %3078 = vpow2.f32 %v2280_v60 }
 0x363   :  { %3080 = vpow2.f32 %v2281_v17  ;;  %v4127_v17 = vsel %vm3714_vm6, %v3718_v8, %v3707_v31  ;;  %v1123_v31 = vrot.slane %v3605_v26, 6 }
 0x364   :  { %3082 = vpow2.f32 %v2282_v42  ;;  %v4129_v42 = vld [vmem:[#allocation17_spill] sm:$0xff] }
 0x365   :  { %3084 = vtanh.f32 %v955_v16 }
 0x36c   :  { %v3079_v6 = vpop.eup %3078 }
 0x36d   :  { %v3081_v45 = vpop.eup %3080  ;;  %v960_v30 = vadd.f32 1.0, %v3079_v6 }
 0x36e   :  { %v966_v47 = vadd.f32 1.0, %v3081_v45  ;;  %v3083_v1 = vpop.eup %3082 }
 0x36f   :  { %3086 = vrcp.f32 %v960_v30  ;;  %v3085_v22 = vpop.eup %3084  ;;  %v973_v63 = vadd.f32 1.0, %v3083_v1 }
 0x370   :  { %3088 = vrcp.f32 %v966_v47  ;;  %v1126_v47 = vrot.slane %v4129_v42, 6 }
 0x371   :  { %3090 = vrcp.f32 %v973_v63 }
 0x379   :  { %v3087_v33 = vpop.eup %3086 }
 0x37a   :  { %v3089_v61 = vpop.eup %3088  ;;  %v977_v7 = vmul.f32 %v3087_v33, %v3085_v22 }
 0x37b   :  { %v976_v2 = vmul.f32 %v3089_v61, %v4127_v17  ;;  %v3091_v45 = vpop.eup %3090 }
 0x37d   :  { %v3777_v43 = vadd.f32 %v977_v7, %v976_v2 }
 0x37f   :  { %3092 = vtanh.f32 %v3777_v43 }
 0x389   :  { %v3093_v30 = vpop.eup %3092 }
 0x38a   :  { %v980_v6 = vmul.f32 %v3093_v30, %v3091_v45 }
 0x38c   :  { %2208 = vrot.lane.b32.xlu0 %v980_v6, %s3335_s4  ;;  %1046 = vmatmul.mubr.f32.vlgmr.msra.gmra.mrb[14].mxu1 %v980_v6 }
 0x38d   :  { %1117 = vmatmul.mubr.f32.vlgmr.msra.gmra.mrb[8].mxu0 %v980_v6  ;;  %2647 = vmatpush1.bf16.msra.mxu1 %v3461_v35 }
 0x38e   :  { %2679 = vmatpush1.bf16.msra.mxu0 %v3506_v23  ;;  %2649 = vmatprep.subr.bf16.mxu1 %v3464_v37 }
 0x38f   :  { %2681 = vmatprep.subr.bf16.mxu0 %v3512_v28  ;;  %1223 = vmatprep.mubr.f32.mxu1 %v4126_v54 }
 0x390   :  { %1294 = vmatprep.mubr.f32.mxu0 %v4126_v54 }
 0x391   :  { %2651 = vmatpush1.bf16.msra.mxu1 %v3468_v44 }
 0x392   :  { %2683 = vmatpush1.bf16.msra.mxu0 %v3518_v38  ;;  %2653 = vmatprep.subr.bf16.mxu1 %v3472_v46 }
 0x393   :  { %2685 = vmatprep.subr.bf16.mxu0 %v3524_v41 }
 0x395   :  { %2655 = vmatpush1.bf16.msra.mxu1 %v3477_v53 }
 0x396   :  { %2687 = vmatpush1.bf16.msra.mxu0 %v3531_v50  ;;  %2657 = vmatprep.subr.bf16.mxu1 %v3481_v55 }
 0x397   :  { %2689 = vmatprep.subr.bf16.mxu0 %v3535_v51 }
 0x399   :  { %2659 = vmatpush1.bf16.msra.mxu1 %v3485_v62 }
 0x39a   :  { %2691 = vmatpush1.bf16.msra.mxu0 %v3539_v58  ;;  %2661 = vmatprep.subr.bf16.mxu1 %v3489_v3 }
 0x39b   :  { %2693 = vmatprep.subr.bf16.mxu0 %v3542_v59 }
 0x39d   :  { %2663 = vmatpush1.bf16.msra.mxu1 %v3492_v11 }
 0x39e   :  { %2695 = vmatpush1.bf16.msra.mxu0 %v3547_v4  ;;  %2665 = vmatprep.subr.bf16.mxu1 %v3496_v14 }
 0x39f   :  { %2697 = vmatprep.subr.bf16.mxu0 %v3551_v5 }
 0x3a1   :  { %2667 = vmatpush1.bf16.msra.mxu1 %v3504_v0 }
 0x3a2   :  { %2699 = vmatpush1.bf16.msra.mxu0 %v3556_v10  ;;  %2669 = vmatprep.subr.bf16.mxu1 %v3510_v27 }
 0x3a3   :  { %2701 = vmatprep.subr.bf16.mxu0 %v3560_v12 }
 0x3a5   :  { %2671 = vmatpush1.bf16.msra.mxu1 %v3516_v36 }
 0x3a6   :  { %2703 = vmatpush1.bf16.msra.mxu0 %v3564_v19  ;;  %2673 = vmatprep.subr.bf16.mxu1 %v3522_v40 }
 0x3a7   :  { %2705 = vmatprep.subr.bf16.mxu0 %v3568_v20 }
 0x3a9   :  { %2675 = vmatpush1.bf16.msra.mxu1 %v3529_v49 }
 0x3aa   :  { %2707 = vmatpush1.bf16.msra.mxu0 %v3572_v24  ;;  %2709 = vmatprep.subr.bf16.mxu1 %v3453_v25 }
 0x3ab   :  { %2741 = vmatprep.subr.bf16.mxu0 %v3498_v15 }
 0x45f   :  { %v1047_v33 = vpop.f32.mrb[14].mxu1 }
 0x460   :  { %v1048_v22 = vadd.f32 %v1047_v33, %v3626_v56  ;;  %v1118_v39 = vpop.f32.mrb[8].mxu0  ;;  %v1049_v8 = vpop.f32.mrb[15].mxu1 }
 0x461   :  { %v1119_v52 = vadd.f32 %v1118_v39, %v3634_v18  ;;  %v1050_v9 = vadd.f32 %v1049_v8, %v3628_v57  ;;  %v1120_v16 = vpop.f32.mrb[9].mxu0 }
 0x462   :  { %v1131_v21 = vadd.f32 %v1123_v31, %v1048_v22  ;;  %v1121_v60 = vadd.f32 %v1120_v16, %v4128_v48 }
 0x463   :  { %v1133_v1 = vadd.f32 %v1125_v34, %v1119_v52  ;;  %v1132_v61 = vadd.f32 %v1124_v13, %v1050_v9 }
 0x464   :  { %v2283_v7 = vmul.f32 -1.442695, %v1131_v21  ;;  %v1134_v26 = vadd.f32 %v1126_v47, %v1121_v60 }
 0x465   :  { %v2284_v63 = vmul.f32 -1.442695, %v1132_v61  ;;  %v4130_v61 = vld [vmem:[#allocation15_spill] sm:$0xff] }
 0x466   :  { %3094 = vpow2.f32 %v2283_v7  ;;  %v2285_v17 = vmul.f32 -1.442695, %v1134_v26 }
 0x467   :  { %3096 = vpow2.f32 %v2284_v63  ;;  %v4131_v63 = vld [vmem:[#allocation18_spill] sm:$0xff] }
 0x468   :  { %3098 = vpow2.f32 %v2285_v17 }
 0x469   :  { %3100 = vtanh.f32 %v1133_v1 }
 0x470   :  { %v3095_v2 = vpop.eup %3094 }
 0x471   :  { %v3097_v32 = vpop.eup %3096  ;;  %v1138_v45 = vadd.f32 1.0, %v3095_v2  ;;  %v4132_v2 = vld [vmem:[#allocation16_spill] sm:$0xff] }
 0x472   :  { %v1144_v29 = vadd.f32 1.0, %v3097_v32  ;;  %v3099_v30 = vpop.eup %3098 }
 0x473   :  { %3102 = vrcp.f32 %v1138_v45  ;;  %v3101_v6 = vpop.eup %3100  ;;  %v1151_v39 = vadd.f32 1.0, %v3099_v30 }
 0x474   :  { %3104 = vrcp.f32 %v1144_v29  ;;  %v4133_v29 = vld [vmem:[#allocation19_spill] sm:$0xff] }
 0x475   :  { %3106 = vrcp.f32 %v1151_v39 }
 0x47d   :  { %v3103_v33 = vpop.eup %3102 }
 0x47e   :  { %v3105_v22 = vpop.eup %3104  ;;  %v1155_v31 = vmul.f32 %v3103_v33, %v3101_v6 }
 0x47f   :  { %v1154_v8 = vmul.f32 %v3105_v22, %v3777_v43  ;;  %v3107_v34 = vpop.eup %3106 }
 0x481   :  { %v3823_v52 = vadd.f32 %v1155_v31, %v1154_v8 }
 0x483   :  { %3108 = vtanh.f32 %v3823_v52 }
 0x48d   :  { %v3109_v9 = vpop.eup %3108 }
 0x48e   :  { %v1158_v13 = vmul.f32 %v3109_v9, %v3107_v34 }
 0x490   :  { %2212 = vrot.lane.b32.xlu0 %v1158_v13, %s3336_s29  ;;  %1224 = vmatmul.mubr.f32.vlgmr.msra.gmra.mrb[16].mxu1 %v1158_v13 }
 0x491   :  { %1295 = vmatmul.mubr.f32.vlgmr.msra.gmra.mrb[10].mxu0 %v1158_v13  ;;  %2711 = vmatpush1.bf16.msra.mxu1 %v3461_v35 }
 0x492   :  { %2743 = vmatpush1.bf16.msra.mxu0 %v3506_v23  ;;  %2713 = vmatprep.subr.bf16.mxu1 %v3464_v37 }
 0x493   :  { %2745 = vmatprep.subr.bf16.mxu0 %v3512_v28  ;;  %1393 = vmatprep.mubr.f32.mxu1 %v4126_v54 }
 0x494   :  { %1464 = vmatprep.mubr.f32.mxu0 %v4126_v54 }
 0x495   :  { %2715 = vmatpush1.bf16.msra.mxu1 %v3468_v44 }
 0x496   :  { %2747 = vmatpush1.bf16.msra.mxu0 %v3518_v38  ;;  %2717 = vmatprep.subr.bf16.mxu1 %v3472_v46 }
 0x497   :  { %2749 = vmatprep.subr.bf16.mxu0 %v3524_v41 }
 0x499   :  { %2719 = vmatpush1.bf16.msra.mxu1 %v3477_v53 }
 0x49a   :  { %2751 = vmatpush1.bf16.msra.mxu0 %v3531_v50  ;;  %2721 = vmatprep.subr.bf16.mxu1 %v3481_v55 }
 0x49b   :  { %2753 = vmatprep.subr.bf16.mxu0 %v3535_v51 }
 0x49d   :  { %2723 = vmatpush1.bf16.msra.mxu1 %v3485_v62 }
 0x49e   :  { %2755 = vmatpush1.bf16.msra.mxu0 %v3539_v58  ;;  %2725 = vmatprep.subr.bf16.mxu1 %v3489_v3 }
 0x49f   :  { %2757 = vmatprep.subr.bf16.mxu0 %v3542_v59 }
 0x4a1   :  { %2727 = vmatpush1.bf16.msra.mxu1 %v3492_v11 }
 0x4a2   :  { %2759 = vmatpush1.bf16.msra.mxu0 %v3547_v4  ;;  %2729 = vmatprep.subr.bf16.mxu1 %v3496_v14 }
 0x4a3   :  { %2761 = vmatprep.subr.bf16.mxu0 %v3551_v5 }
 0x4a5   :  { %2731 = vmatpush1.bf16.msra.mxu1 %v3504_v0 }
 0x4a6   :  { %2763 = vmatpush1.bf16.msra.mxu0 %v3556_v10  ;;  %2733 = vmatprep.subr.bf16.mxu1 %v3510_v27 }
 0x4a7   :  { %2765 = vmatprep.subr.bf16.mxu0 %v3560_v12 }
 0x4a9   :  { %2735 = vmatpush1.bf16.msra.mxu1 %v3516_v36 }
 0x4aa   :  { %2767 = vmatpush1.bf16.msra.mxu0 %v3564_v19  ;;  %2737 = vmatprep.subr.bf16.mxu1 %v3522_v40 }
 0x4ab   :  { %2769 = vmatprep.subr.bf16.mxu0 %v3568_v20 }
 0x4ad   :  { %2739 = vmatpush1.bf16.msra.mxu1 %v3529_v49 }
 0x4ae   :  { %2771 = vmatpush1.bf16.msra.mxu0 %v3572_v24  ;;  %2773 = vmatprep.subr.bf16.mxu1 %v3453_v25 }
 0x4af   :  { %2805 = vmatprep.subr.bf16.mxu0 %v3498_v15 }
 0x563   :  { %v1225_v43 = vpop.f32.mrb[16].mxu1 }
 0x564   :  { %v1226_v16 = vadd.f32 %v1225_v43, %v3626_v56  ;;  %v1296_v21 = vpop.f32.mrb[10].mxu0  ;;  %v1227_v60 = vpop.f32.mrb[17].mxu1 }
 0x565   :  { %v1297_v42 = vadd.f32 %v1296_v21, %v3634_v18  ;;  %v1228_v47 = vadd.f32 %v1227_v60, %v3628_v57  ;;  %v1298_v1 = vpop.f32.mrb[11].mxu0 }
 0x566   :  { %v1301_v7 = vadd.f32 %v1226_v16, %v4130_v61  ;;  %v1299_v26 = vadd.f32 %v1298_v1, %v4128_v48 }
 0x567   :  { %v1303_v17 = vadd.f32 %v1297_v42, %v4131_v63  ;;  %v1302_v32 = vadd.f32 %v1228_v47, %v4132_v2 }
 0x568   :  { %v2286_v45 = vmul.f32 -1.442695, %v1301_v7  ;;  %v1304_v30 = vadd.f32 %v1299_v26, %v4133_v29 }
 0x569   :  { %v2287_v6 = vmul.f32 -1.442695, %v1302_v32 }
 0x56a   :  { %3110 = vpow2.f32 %v2286_v45  ;;  %v2288_v33 = vmul.f32 -1.442695, %v1304_v30 }
 0x56b   :  { %3112 = vpow2.f32 %v2287_v6  ;;  %v1477_v6 = vrot.slane %v4131_v63, 2 }
 0x56c   :  { %3114 = vpow2.f32 %v2288_v33 }
 0x56d   :  { %3116 = vtanh.f32 %v1303_v17  ;;  %v1475_v17 = vrot.slane %v4130_v61, 2 }
 0x574   :  { %v3111_v22 = vpop.eup %3110 }
 0x575   :  { %v3113_v31 = vpop.eup %3112  ;;  %v1308_v39 = vadd.f32 1.0, %v3111_v22  ;;  %v1476_v22 = vrot.slane %v4132_v2, 2 }
 0x576   :  { %v1314_v8 = vadd.f32 1.0, %v3113_v31  ;;  %v3115_v34 = vpop.eup %3114 }
 0x577   :  { %3118 = vrcp.f32 %v1308_v39  ;;  %v3117_v9 = vpop.eup %3116  ;;  %v1321_v21 = vadd.f32 1.0, %v3115_v34  ;;  %v1478_v34 = vrot.slane %v4133_v29, 2 }
 0x578   :  { %3120 = vrcp.f32 %v1314_v8 }
 0x579   :  { %3122 = vrcp.f32 %v1321_v21 }
 0x581   :  { %v3119_v13 = vpop.eup %3118 }
 0x582   :  { %v3121_v43 = vpop.eup %3120  ;;  %v1325_v16 = vmul.f32 %v3119_v13, %v3117_v9 }
 0x583   :  { %v1324_v60 = vmul.f32 %v3121_v43, %v3823_v52  ;;  %v3123_v47 = vpop.eup %3122 }
 0x585   :  { %v3869_v42 = vadd.f32 %v1325_v16, %v1324_v60 }
 0x587   :  { %3124 = vtanh.f32 %v3869_v42 }
 0x591   :  { %v3125_v1 = vpop.eup %3124 }
 0x592   :  { %v1328_v7 = vmul.f32 %v3125_v1, %v3123_v47 }
 0x594   :  { %2216 = vrot.lane.b32.xlu1 %v1328_v7, %s3337_s30  ;;  %1394 = vmatmul.mubr.f32.vlgmr.msra.gmra.mrb[18].mxu1 %v1328_v7 }
 0x595   :  { %1465 = vmatmul.mubr.f32.vlgmr.msra.gmra.mrb[12].mxu0 %v1328_v7  ;;  %2775 = vmatpush1.bf16.msra.mxu1 %v3461_v35 }
 0x596   :  { %2807 = vmatpush1.bf16.msra.mxu0 %v3506_v23  ;;  %2777 = vmatprep.subr.bf16.mxu1 %v3464_v37 }
 0x597   :  { %2809 = vmatprep.subr.bf16.mxu0 %v3512_v28  ;;  %1575 = vmatprep.mubr.f32.mxu1 %v4126_v54 }
 0x598   :  { %1646 = vmatprep.mubr.f32.mxu0 %v4126_v54 }
 0x599   :  { %2779 = vmatpush1.bf16.msra.mxu1 %v3468_v44 }
 0x59a   :  { %2811 = vmatpush1.bf16.msra.mxu0 %v3518_v38  ;;  %2781 = vmatprep.subr.bf16.mxu1 %v3472_v46 }
 0x59b   :  { %2813 = vmatprep.subr.bf16.mxu0 %v3524_v41 }
 0x59d   :  { %2783 = vmatpush1.bf16.msra.mxu1 %v3477_v53 }
 0x59e   :  { %2815 = vmatpush1.bf16.msra.mxu0 %v3531_v50  ;;  %2785 = vmatprep.subr.bf16.mxu1 %v3481_v55 }
 0x59f   :  { %2817 = vmatprep.subr.bf16.mxu0 %v3535_v51 }
 0x5a1   :  { %2787 = vmatpush1.bf16.msra.mxu1 %v3485_v62 }
 0x5a2   :  { %2819 = vmatpush1.bf16.msra.mxu0 %v3539_v58  ;;  %2789 = vmatprep.subr.bf16.mxu1 %v3489_v3 }
 0x5a3   :  { %2821 = vmatprep.subr.bf16.mxu0 %v3542_v59 }
 0x5a5   :  { %2791 = vmatpush1.bf16.msra.mxu1 %v3492_v11 }
 0x5a6   :  { %2823 = vmatpush1.bf16.msra.mxu0 %v3547_v4  ;;  %2793 = vmatprep.subr.bf16.mxu1 %v3496_v14 }
 0x5a7   :  { %2825 = vmatprep.subr.bf16.mxu0 %v3551_v5 }
 0x5a9   :  { %2795 = vmatpush1.bf16.msra.mxu1 %v3504_v0 }
 0x5aa   :  { %2827 = vmatpush1.bf16.msra.mxu0 %v3556_v10  ;;  %2797 = vmatprep.subr.bf16.mxu1 %v3510_v27 }
 0x5ab   :  { %2829 = vmatprep.subr.bf16.mxu0 %v3560_v12 }
 0x5ad   :  { %2799 = vmatpush1.bf16.msra.mxu1 %v3516_v36 }
 0x5ae   :  { %2831 = vmatpush1.bf16.msra.mxu0 %v3564_v19  ;;  %2801 = vmatprep.subr.bf16.mxu1 %v3522_v40 }
 0x5af   :  { %2833 = vmatprep.subr.bf16.mxu0 %v3568_v20 }
 0x5b1   :  { %2803 = vmatpush1.bf16.msra.mxu1 %v3529_v49 }
 0x5b2   :  { %2835 = vmatpush1.bf16.msra.mxu0 %v3572_v24  ;;  %2837 = vmatprep.subr.bf16.mxu1 %v3453_v25 }
 0x5b3   :  { %2869 = vmatprep.subr.bf16.mxu0 %v3498_v15 }
 0x667   :  { %v1395_v52 = vpop.f32.mrb[18].mxu1 }
 0x668   :  { %v1396_v26 = vadd.f32 %v1395_v52, %v3626_v56  ;;  %v1466_v32 = vpop.f32.mrb[12].mxu0  ;;  %v1397_v45 = vpop.f32.mrb[19].mxu1 }
 0x669   :  { %v1467_v30 = vadd.f32 %v1466_v32, %v3634_v18  ;;  %v1398_v33 = vadd.f32 %v1397_v45, %v3628_v57  ;;  %v1468_v31 = vpop.f32.mrb[13].mxu0 }
 0x66a   :  { %v1483_v39 = vadd.f32 %v1475_v17, %v1396_v26  ;;  %v1469_v8 = vadd.f32 %v1468_v31, %v4128_v48 }
 0x66b   :  { %v1485_v9 = vadd.f32 %v1477_v6, %v1467_v30  ;;  %v1484_v13 = vadd.f32 %v1476_v22, %v1398_v33 }
 0x66c   :  { %v2289_v43 = vmul.f32 -1.442695, %v1483_v39  ;;  %v1486_v16 = vadd.f32 %v1478_v34, %v1469_v8 }
 0x66d   :  { %v2290_v21 = vmul.f32 -1.442695, %v1484_v13 }
 0x66e   :  { %3126 = vpow2.f32 %v2289_v43  ;;  %v2291_v60 = vmul.f32 -1.442695, %v1486_v16 }
 0x66f   :  { %3128 = vpow2.f32 %v2290_v21  ;;  %v1655_v21 = vrot.slane %v4131_v63, 4 }
 0x670   :  { %3130 = vpow2.f32 %v2291_v60 }
 0x671   :  { %3132 = vtanh.f32 %v1485_v9  ;;  %v1653_v9 = vrot.slane %v4130_v61, 4 }
 0x678   :  { %v3127_v47 = vpop.eup %3126 }
 0x679   :  { %v3129_v1 = vpop.eup %3128  ;;  %v1490_v7 = vadd.f32 1.0, %v3127_v47  ;;  %v1654_v47 = vrot.slane %v4132_v2, 4 }
 0x67a   :  { %v1496_v52 = vadd.f32 1.0, %v3129_v1  ;;  %v3131_v26 = vpop.eup %3130 }
 0x67b   :  { %3134 = vrcp.f32 %v1490_v7  ;;  %v3133_v17 = vpop.eup %3132  ;;  %v1503_v6 = vadd.f32 1.0, %v3131_v26  ;;  %v1656_v26 = vrot.slane %v4133_v29, 4 }
 0x67c   :  { %3136 = vrcp.f32 %v1496_v52 }
 0x67d   :  { %3138 = vrcp.f32 %v1503_v6 }
 0x685   :  { %v3135_v32 = vpop.eup %3134 }
 0x686   :  { %v3137_v45 = vpop.eup %3136  ;;  %v1507_v30 = vmul.f32 %v3135_v32, %v3133_v17 }
 0x687   :  { %v1506_v33 = vmul.f32 %v3137_v45, %v3869_v42  ;;  %v3139_v31 = vpop.eup %3138 }
 0x689   :  { %v3915_v22 = vadd.f32 %v1507_v30, %v1506_v33 }
 0x68b   :  { %3140 = vtanh.f32 %v3915_v22 }
 0x695   :  { %v3141_v39 = vpop.eup %3140 }
 0x696   :  { %v1510_v8 = vmul.f32 %v3141_v39, %v3139_v31 }
 0x698   :  { %2220 = vrot.lane.b32.xlu1 %v1510_v8, %s3338_s8  ;;  %1576 = vmatmul.mubr.f32.vlgmr.msra.gmra.mrb[20].mxu1 %v1510_v8 }
 0x699   :  { %1647 = vmatmul.mubr.f32.vlgmr.msra.gmra.mrb[14].mxu0 %v1510_v8  ;;  %2839 = vmatpush1.bf16.msra.mxu1 %v3461_v35 }
 0x69a   :  { %2871 = vmatpush1.bf16.msra.mxu0 %v3506_v23  ;;  %2841 = vmatprep.subr.bf16.mxu1 %v3464_v37 }
 0x69b   :  { %2873 = vmatprep.subr.bf16.mxu0 %v3512_v28  ;;  %1753 = vmatprep.mubr.f32.mxu1 %v4126_v54 }
 0x69c   :  { %1824 = vmatprep.mubr.f32.mxu0 %v4126_v54 }
 0x69d   :  { %2843 = vmatpush1.bf16.msra.mxu1 %v3468_v44 }
 0x69e   :  { %2875 = vmatpush1.bf16.msra.mxu0 %v3518_v38  ;;  %2845 = vmatprep.subr.bf16.mxu1 %v3472_v46 }
 0x69f   :  { %2877 = vmatprep.subr.bf16.mxu0 %v3524_v41 }
 0x6a1   :  { %2847 = vmatpush1.bf16.msra.mxu1 %v3477_v53 }
 0x6a2   :  { %2879 = vmatpush1.bf16.msra.mxu0 %v3531_v50  ;;  %2849 = vmatprep.subr.bf16.mxu1 %v3481_v55 }
 0x6a3   :  { %2881 = vmatprep.subr.bf16.mxu0 %v3535_v51 }
 0x6a5   :  { %2851 = vmatpush1.bf16.msra.mxu1 %v3485_v62 }
 0x6a6   :  { %2883 = vmatpush1.bf16.msra.mxu0 %v3539_v58  ;;  %2853 = vmatprep.subr.bf16.mxu1 %v3489_v3 }
 0x6a7   :  { %2885 = vmatprep.subr.bf16.mxu0 %v3542_v59 }
 0x6a9   :  { %2855 = vmatpush1.bf16.msra.mxu1 %v3492_v11 }
 0x6aa   :  { %2887 = vmatpush1.bf16.msra.mxu0 %v3547_v4  ;;  %2857 = vmatprep.subr.bf16.mxu1 %v3496_v14 }
 0x6ab   :  { %2889 = vmatprep.subr.bf16.mxu0 %v3551_v5 }
 0x6ad   :  { %2859 = vmatpush1.bf16.msra.mxu1 %v3504_v0 }
 0x6ae   :  { %2891 = vmatpush1.bf16.msra.mxu0 %v3556_v10  ;;  %2861 = vmatprep.subr.bf16.mxu1 %v3510_v27 }
 0x6af   :  { %2893 = vmatprep.subr.bf16.mxu0 %v3560_v12 }
 0x6b1   :  { %2863 = vmatpush1.bf16.msra.mxu1 %v3516_v36 }
 0x6b2   :  { %2895 = vmatpush1.bf16.msra.mxu0 %v3564_v19  ;;  %2865 = vmatprep.subr.bf16.mxu1 %v3522_v40 }
 0x6b3   :  { %2897 = vmatprep.subr.bf16.mxu0 %v3568_v20 }
 0x6b5   :  { %2867 = vmatpush1.bf16.msra.mxu1 %v3529_v49 }
 0x6b6   :  { %2899 = vmatpush1.bf16.msra.mxu0 %v3572_v24  ;;  %2901 = vmatprep.subr.bf16.mxu1 %v3453_v25 }
 0x6b7   :  { %2933 = vmatprep.subr.bf16.mxu0 %v3498_v15 }
 0x76b   :  { %v1577_v42 = vpop.f32.mrb[20].mxu1 }
 0x76c   :  { %v1578_v34 = vadd.f32 %v1577_v42, %v3626_v56  ;;  %v1648_v13 = vpop.f32.mrb[14].mxu0  ;;  %v1579_v43 = vpop.f32.mrb[21].mxu1 }
 0x76d   :  { %v1649_v16 = vadd.f32 %v1648_v13, %v3634_v18  ;;  %v1580_v60 = vadd.f32 %v1579_v43, %v3628_v57  ;;  %v1650_v1 = vpop.f32.mrb[15].mxu0 }
 0x76e   :  { %v1661_v7 = vadd.f32 %v1653_v9, %v1578_v34  ;;  %v1651_v52 = vadd.f32 %v1650_v1, %v4128_v48 }
 0x76f   :  { %v1663_v17 = vadd.f32 %v1655_v21, %v1649_v16  ;;  %v1662_v32 = vadd.f32 %v1654_v47, %v1580_v60 }
 0x770   :  { %v2292_v45 = vmul.f32 -1.442695, %v1661_v7  ;;  %v1664_v30 = vadd.f32 %v1656_v26, %v1651_v52 }
 0x771   :  { %v2293_v6 = vmul.f32 -1.442695, %v1662_v32  ;;  %v1831_v32 = vrot.slane %v4130_v61, 6 }
 0x772   :  { %3142 = vpow2.f32 %v2292_v45  ;;  %v2294_v33 = vmul.f32 -1.442695, %v1664_v30  ;;  %v1833_v30 = vrot.slane %v4131_v63, 6 }
 0x773   :  { %3144 = vpow2.f32 %v2293_v6 }
 0x774   :  { %3146 = vpow2.f32 %v2294_v33 }
 0x775   :  { %3148 = vtanh.f32 %v1663_v17 }
 0x77c   :  { %v3143_v31 = vpop.eup %3142 }
 0x77d   :  { %v3145_v39 = vpop.eup %3144  ;;  %v1668_v8 = vadd.f32 1.0, %v3143_v31 }
 0x77e   :  { %v1674_v42 = vadd.f32 1.0, %v3145_v39  ;;  %v3147_v34 = vpop.eup %3146  ;;  %v1832_v39 = vrot.slane %v4132_v2, 6 }
 0x77f   :  { %3150 = vrcp.f32 %v1668_v8  ;;  %v3149_v9 = vpop.eup %3148  ;;  %v1681_v21 = vadd.f32 1.0, %v3147_v34 }
 0x780   :  { %3152 = vrcp.f32 %v1674_v42 }
 0x781   :  { %3154 = vrcp.f32 %v1681_v21 }
 0x789   :  { %v3151_v13 = vpop.eup %3150 }
 0x78a   :  { %v3153_v43 = vpop.eup %3152  ;;  %v1685_v16 = vmul.f32 %v3151_v13, %v3149_v9 }
 0x78b   :  { %v1684_v60 = vmul.f32 %v3153_v43, %v3915_v22  ;;  %v3155_v1 = vpop.eup %3154 }
 0x78d   :  { %v3961_v47 = vadd.f32 %v1685_v16, %v1684_v60 }
 0x78f   :  { %3156 = vtanh.f32 %v3961_v47 }
 0x799   :  { %v3157_v7 = vpop.eup %3156 }
 0x79a   :  { %v3964_v52 = vmul.f32 %v3157_v7, %v3155_v1 }
 0x79c   :  { %1754 = vmatmul.mubr.f32.vlgmr.msra.gmra.mrb[22].mxu1 %v3964_v52  ;;  %1825 = vmatmul.mubr.f32.vlgmr.msra.gmra.mrb[16].mxu0 %v3964_v52 }
 0x79d   :  { %2903 = vmatpush1.bf16.msra.mxu1 %v3461_v35  ;;  %2935 = vmatpush1.bf16.msra.mxu0 %v3506_v23 }
 0x79e   :  { %2905 = vmatprep.subr.bf16.mxu1 %v3464_v37  ;;  %2937 = vmatprep.subr.bf16.mxu0 %v3512_v28 }
 0x79f   :  { %1931 = vmatprep.mubr.f32.mxu1 %v4126_v54  ;;  %2002 = vmatprep.mubr.f32.mxu0 %v4126_v54 }
 0x7a1   :  { %2907 = vmatpush1.bf16.msra.mxu1 %v3468_v44  ;;  %2939 = vmatpush1.bf16.msra.mxu0 %v3518_v38 }
 0x7a2   :  { %2909 = vmatprep.subr.bf16.mxu1 %v3472_v46  ;;  %2941 = vmatprep.subr.bf16.mxu0 %v3524_v41 }
 0x7a5   :  { %2911 = vmatpush1.bf16.msra.mxu1 %v3477_v53  ;;  %2943 = vmatpush1.bf16.msra.mxu0 %v3531_v50 }
 0x7a6   :  { %2913 = vmatprep.subr.bf16.mxu1 %v3481_v55  ;;  %2945 = vmatprep.subr.bf16.mxu0 %v3535_v51 }
 0x7a9   :  { %2915 = vmatpush1.bf16.msra.mxu1 %v3485_v62  ;;  %2947 = vmatpush1.bf16.msra.mxu0 %v3539_v58 }
 0x7aa   :  { %2917 = vmatprep.subr.bf16.mxu1 %v3489_v3  ;;  %2949 = vmatprep.subr.bf16.mxu0 %v3542_v59 }
 0x7ad   :  { %2919 = vmatpush1.bf16.msra.mxu1 %v3492_v11  ;;  %2951 = vmatpush1.bf16.msra.mxu0 %v3547_v4 }
 0x7ae   :  { %2921 = vmatprep.subr.bf16.mxu1 %v3496_v14  ;;  %2953 = vmatprep.subr.bf16.mxu0 %v3551_v5 }
 0x7b1   :  { %2923 = vmatpush1.bf16.msra.mxu1 %v3504_v0  ;;  %2955 = vmatpush1.bf16.msra.mxu0 %v3556_v10 }
 0x7b2   :  { %2925 = vmatprep.subr.bf16.mxu1 %v3510_v27  ;;  %2957 = vmatprep.subr.bf16.mxu0 %v3560_v12 }
 0x7b5   :  { %2927 = vmatpush1.bf16.msra.mxu1 %v3516_v36  ;;  %2959 = vmatpush1.bf16.msra.mxu0 %v3564_v19 }
 0x7b6   :  { %2929 = vmatprep.subr.bf16.mxu1 %v3522_v40  ;;  %2961 = vmatprep.subr.bf16.mxu0 %v3568_v20 }
 0x7b9   :  { %2931 = vmatpush1.bf16.msra.mxu1 %v3529_v49  ;;  %2963 = vmatpush1.bf16.msra.mxu0 %v3572_v24 }
 0x7ba   :  { %2965 = vmatprep.subr.bf16.mxu1 %v3453_v25  ;;  %2997 = vmatprep.subr.bf16.mxu0 %v3498_v15  ;;  %v1834_v15 = vrot.slane %v4133_v29, 6 }
 0x86f   :  { %v1755_v22 = vpop.f32.mrb[22].mxu1  ;;  %v1826_v26 = vpop.f32.mrb[16].mxu0 }
 0x870   :  { %v1756_v17 = vadd.f32 %v1755_v22, %v3626_v56  ;;  %v1827_v45 = vadd.f32 %v1826_v26, %v3634_v18  ;;  %v1757_v6 = vpop.f32.mrb[23].mxu1  ;;  %v1828_v33 = vpop.f32.mrb[17].mxu0 }
 0x871   :  { %v1758_v31 = vadd.f32 %v1757_v6, %v3628_v57  ;;  %v1829_v25 = vadd.f32 %v1828_v33, %v4128_v48 }
 0x872   :  { %v1839_v8 = vadd.f32 %v1831_v32, %v1756_v17  ;;  %v1841_v42 = vadd.f32 %v1833_v30, %v1827_v45 }
 0x873   :  { %v1840_v34 = vadd.f32 %v1832_v39, %v1758_v31  ;;  %v1842_v9 = vadd.f32 %v1834_v15, %v1829_v25 }
 0x874   :  { %v2295_v13 = vmul.f32 -1.442695, %v1839_v8 }
 0x875   :  { %v2296_v61 = vmul.f32 -1.442695, %v1840_v34  ;;  %v2297_v43 = vmul.f32 -1.442695, %v1842_v9 }
 0x876   :  { %3158 = vpow2.f32 %v2295_v13 }
 0x877   :  { %3160 = vpow2.f32 %v2296_v61 }
 0x878   :  { %3162 = vpow2.f32 %v2297_v43 }
 0x879   :  { %3164 = vtanh.f32 %v1841_v42 }
 0x880   :  { %v3159_v63 = vpop.eup %3158 }
 0x881   :  { %v3161_v16 = vpop.eup %3160  ;;  %v1846_v21 = vadd.f32 1.0, %v3159_v63 }
 0x882   :  { %v1852_v60 = vadd.f32 1.0, %v3161_v16  ;;  %v3163_v2 = vpop.eup %3162 }
 0x883   :  { %3166 = vrcp.f32 %v1846_v21  ;;  %v3165_v1 = vpop.eup %3164  ;;  %v1859_v26 = vadd.f32 1.0, %v3163_v2 }
 0x884   :  { %3168 = vrcp.f32 %v1852_v60 }
 0x885   :  { %3170 = vrcp.f32 %v1859_v26 }
 0x88d   :  { %v3167_v29 = vpop.eup %3166 }
 0x88e   :  { %v3169_v7 = vpop.eup %3168  ;;  %v1863_v22 = vmul.f32 %v3167_v29, %v3165_v1 }
 0x88f   :  { %v1862_v17 = vmul.f32 %v3169_v7, %v3961_v47  ;;  %v3171_v45 = vpop.eup %3170 }
 0x891   :  { %v4011_v32 = vadd.f32 %v1863_v22, %v1862_v17  ;;  %v2209_v17 = vpop.permute.xlu0 %2208 }
 0x893   :  { %3172 = vtanh.f32 %v4011_v32 }
 0x89d   :  { %v3173_v30 = vpop.eup %3172 }
 0x89e   :  { %v4014_v6 = vmul.f32 %v3173_v30, %v3171_v45  ;;  %v2213_v45 = vpop.permute.xlu0 %2212 }
 0x8a0   :  { %2224 = vrot.lane.b32.xlu0 %v4014_v6, %s3339_s9  ;;  %1932 = vmatmul.mubr.f32.vlgmr.msra.gmra.mrb[24].mxu1 %v4014_v6 }
 0x8a1   :  { %2003 = vmatmul.mubr.f32.vlgmr.msra.gmra.mrb[18].mxu0 %v4014_v6  ;;  %2967 = vmatpush1.bf16.msra.mxu1 %v3461_v35 }
 0x8a2   :  { %2999 = vmatpush1.bf16.msra.mxu0 %v3506_v23  ;;  %2969 = vmatprep.subr.bf16.mxu1 %v3464_v37 }
 0x8a3   :  { %3001 = vmatprep.subr.bf16.mxu0 %v3512_v28  ;;  %2102 = vmatprep.mubr.f32.mxu1 %v4126_v54 }
 0x8a4   :  { %2173 = vmatprep.mubr.f32.mxu0 %v4126_v54 }
 0x8a5   :  { %2971 = vmatpush1.bf16.msra.mxu1 %v3468_v44 }
 0x8a6   :  { %3003 = vmatpush1.bf16.msra.mxu0 %v3518_v38  ;;  %2973 = vmatprep.subr.bf16.mxu1 %v3472_v46  ;;  %v4134_v38 = vld [vmem:[#allocation22_spill] sm:$0xff] }
 0x8a7   :  { %3005 = vmatprep.subr.bf16.mxu0 %v3524_v41  ;;  %vm354_vm7 = vcmp.ge.s32.totalorder %v4134_v38, 64  ;;  %vm355_vm8 = vcmp.lt.s32.totalorder %v4134_v38, 80 }
 0x8a8   :  { %vm4057_vm9 = vmand %vm354_vm7, %vm355_vm8 }
 0x8a9   :  { %2975 = vmatpush1.bf16.msra.mxu1 %v3477_v53  ;;  %vm2033_vm10 = vmor %vm3700_vm5, %vm4057_vm9 }
 0x8aa   :  { %3007 = vmatpush1.bf16.msra.mxu0 %v3531_v50  ;;  %2977 = vmatprep.subr.bf16.mxu1 %v3481_v55 }
 0x8ab   :  { %3009 = vmatprep.subr.bf16.mxu0 %v3535_v51 }
 0x8ad   :  { %2979 = vmatpush1.bf16.msra.mxu1 %v3485_v62 }
 0x8ae   :  { %3011 = vmatpush1.bf16.msra.mxu0 %v3539_v58  ;;  %2981 = vmatprep.subr.bf16.mxu1 %v3489_v3 }
 0x8af   :  { %3013 = vmatprep.subr.bf16.mxu0 %v3542_v59 }
 0x8b1   :  { %2983 = vmatpush1.bf16.msra.mxu1 %v3492_v11 }
 0x8b2   :  { %3015 = vmatpush1.bf16.msra.mxu0 %v3547_v4  ;;  %2985 = vmatprep.subr.bf16.mxu1 %v3496_v14 }
 0x8b3   :  { %3017 = vmatprep.subr.bf16.mxu0 %v3551_v5 }
 0x8b5   :  { %2987 = vmatpush1.bf16.msra.mxu1 %v3504_v0 }
 0x8b6   :  { %3019 = vmatpush1.bf16.msra.mxu0 %v3556_v10  ;;  %2989 = vmatprep.subr.bf16.mxu1 %v3510_v27 }
 0x8b7   :  { %3021 = vmatprep.subr.bf16.mxu0 %v3560_v12 }
 0x8b9   :  { %2991 = vmatpush1.bf16.msra.mxu1 %v3516_v36 }
 0x8ba   :  { %3023 = vmatpush1.bf16.msra.mxu0 %v3564_v19  ;;  %2993 = vmatprep.subr.bf16.mxu1 %v3522_v40 }
 0x8bb   :  { %3025 = vmatprep.subr.bf16.mxu0 %v3568_v20 }
 0x8bd   :  { %2995 = vmatpush1.bf16.msra.mxu1 %v3529_v49 }
 0x8be   :  { %3027 = vmatpush1.bf16.msra.mxu0 %v3572_v24 }
 0x973   :  { %v1933_v35 = vpop.f32.mrb[24].mxu1 }
 0x974   :  { %v1934_v37 = vadd.f32 %v1933_v35, %v3626_v56  ;;  %v2004_v44 = vpop.f32.mrb[18].mxu0  ;;  %v1935_v46 = vpop.f32.mrb[25].mxu1 }
 0x975   :  { %v1936_v53 = vadd.f32 %v1935_v46, %v3628_v57  ;;  %v2006_v55 = vpop.f32.mrb[19].mxu0  ;;  %v2005_v0 = vadd.f32 %v2004_v44, %v3634_v18  ;;  %v2271_v44 = vld [vmem:[%s4099_s6] ss:$0 sm:$0xff] }
 0x976   :  { %v2298_v62 = vmul.f32 -1.442695, %v1934_v37  ;;  %v2007_v11 = vadd.f32 %v2006_v55, %v4128_v48  ;;  %v2225_v37 = vpop.permute.xlu0 %2224 }
 0x977   :  { %v2299_v3 = vmul.f32 -1.442695, %v1936_v53 }
 0x978   :  { %3174 = vpow2.f32 %v2298_v62  ;;  %v2300_v14 = vmul.f32 -1.442695, %v2007_v11 }
 0x979   :  { %3176 = vpow2.f32 %v2299_v3  ;;  %v4138_v3 = vld [vmem:[#allocation20_spill] sm:$0xff] }
 0x97a   :  { %3178 = vpow2.f32 %v2300_v14  ;;  %v344_v11 = vadd.f32 %v2271_v44, %v4138_v3 }
 0x97b   :  { %3180 = vtanh.f32 %v2005_v0 }
 0x982   :  { %v3175_v23 = vpop.eup %3174 }
 0x983   :  { %v3177_v27 = vpop.eup %3176  ;;  %v2012_v28 = vadd.f32 1.0, %v3175_v23 }
 0x984   :  { %v2018_v36 = vadd.f32 1.0, %v3177_v27  ;;  %v3179_v40 = vpop.eup %3178 }
 0x985   :  { %3182 = vrcp.f32 %v2012_v28  ;;  %v3181_v41 = vpop.eup %3180  ;;  %v2025_v59 = vadd.f32 1.0, %v3179_v40 }
 0x986   :  { %3184 = vrcp.f32 %v2018_v36 }
 0x987   :  { %3186 = vrcp.f32 %v2025_v59 }
 0x98f   :  { %v3183_v49 = vpop.eup %3182 }
 0x990   :  { %v3185_v51 = vpop.eup %3184  ;;  %v2029_v58 = vmul.f32 %v3183_v49, %v3181_v41 }
 0x991   :  { %v2028_v4 = vmul.f32 %v3185_v51, %v4011_v32  ;;  %v3187_v19 = vpop.eup %3186 }
 0x993   :  { %v2030_v10 = vadd.f32 %v2029_v58, %v2028_v4 }
 0x995   :  { %3188 = vtanh.f32 %v2030_v10  ;;  %v2036_v12 = vsel %vm2033_vm10, %v2030_v10, %v4011_v32  ;;  %v2217_v32 = vpop.permute.xlu1 %2216 }
 0x999   :  { %v2221_v30 = vpop.permute.xlu1 %2220 }
 0x99f   :  { %v3189_v20 = vpop.eup %3188 }
 0x9a0   :  { %v2032_v24 = vmul.f32 %v3189_v20, %v3187_v19 }
 0x9a2   :  { %v2037_v54 = vsel %vm2033_vm10, %v2032_v24, %v4014_v6  ;;  %v2235_v6 = vsel %vm92_vm1, %v2209_v17, %v2213_v45 }
 0x9a3   :  { %2228 = vrot.lane.b32.xlu1 %v2037_v54, %s3326_s12  ;;  %2103 = vmatmul.mubr.f32.vlgmr.msra.gmra.mrb[26].mxu1 %v2037_v54  ;;  %s3340_s12 = smov 48   ;;  %v2237_v35 = vsel %vm2236_vm11, %v2235_v6, %v2217_v32 }
 0x9a4   :  { %2174 = vmatmul.mubr.f32.vlgmr.msra.gmra.mrb[20].mxu0 %v2037_v54  ;;  %v2239_v46 = vsel %vm2238_vm12, %v2237_v35, %v2221_v30 }
 0x9a5   :  { %v2241_v55 = vsel %vm2240_vm13, %v2239_v46, %v3964_v52 }
 0x9a6   :  { %v2243_v62 = vsel %vm2242_vm14, %v2241_v55, %v2225_v37 }
 0xa15   :  { %v2229_v53 = vpop.permute.xlu1 %2228 }
 0xa16   :  { %v2245_v14 = vsel %vm2244_vm15, %v2243_v62, %v2229_v53 }
 0xa76   :  { %v2104_v47 = vpop.f32.mrb[26].mxu1 }
 0xa77   :  { %v2105_v33 = vadd.f32 %v2104_v47, %v3626_v56  ;;  %v2175_v31 = vpop.f32.mrb[20].mxu0  ;;  %v2106_v39 = vpop.f32.mrb[27].mxu1 }
 0xa78   :  { %v2107_v25 = vadd.f32 %v2106_v39, %v3628_v57  ;;  %v2177_v15 = vpop.f32.mrb[21].mxu0  ;;  %v2176_v13 = vadd.f32 %v2175_v31, %v3634_v18 }
 0xa79   :  { %v2301_v8 = vmul.f32 -1.442695, %v2105_v33  ;;  %v2178_v34 = vadd.f32 %v2177_v15, %v4128_v48 }
 0xa7a   :  { %v2302_v42 = vmul.f32 -1.442695, %v2107_v25 }
 0xa7b   :  { %3190 = vpow2.f32 %v2301_v8  ;;  %v2303_v9 = vmul.f32 -1.442695, %v2178_v34 }
 0xa7c   :  { %3192 = vpow2.f32 %v2302_v42 }
 0xa7d   :  { %3194 = vpow2.f32 %v2303_v9 }
 0xa7e   :  { %3196 = vtanh.f32 %v2176_v13 }
 0xa85   :  { %v3191_v61 = vpop.eup %3190 }
 0xa86   :  { %v3193_v43 = vpop.eup %3192  ;;  %v2183_v63 = vadd.f32 1.0, %v3191_v61 }
 0xa87   :  { %v2189_v56 = vadd.f32 1.0, %v3193_v43  ;;  %v3195_v16 = vpop.eup %3194 }
 0xa88   :  { %3198 = vrcp.f32 %v2183_v63  ;;  %v3197_v57 = vpop.eup %3196  ;;  %v2196_v1 = vadd.f32 1.0, %v3195_v16 }
 0xa89   :  { %3200 = vrcp.f32 %v2189_v56 }
 0xa8a   :  { %3202 = vrcp.f32 %v2196_v1 }
 0xa92   :  { %v3199_v21 = vpop.eup %3198 }
 0xa93   :  { %v3201_v60 = vpop.eup %3200  ;;  %v2200_v2 = vmul.f32 %v3199_v21, %v3197_v57 }
 0xa94   :  { %v2199_v29 = vmul.f32 %v3201_v60, %v2036_v12  ;;  %v3203_v48 = vpop.eup %3202 }
 0xa96   :  { %v2201_v7 = vadd.f32 %v2200_v2, %v2199_v29 }
 0xa98   :  { %3204 = vtanh.f32 %v2201_v7 }
 0xaa2   :  { %v3205_v18 = vpop.eup %3204 }
 0xaa3   :  { %v2203_v22 = vmul.f32 %v3205_v18, %v3203_v48 }
 0xaa5   :  { %v2206_v26 = vsel %vm4057_vm9, %v2203_v22, %v2037_v54 }
 0xaa6   :  { %2232 = vrot.lane.b32.xlu0 %v2206_v26, %s3340_s12 }
 0xb18   :  { %v2233_v0 = vpop.permute.xlu0 %2232 }
 0xb19   :  { %v2247_v23 = vsel %vm2246_vm0, %v2245_v14, %v2233_v0 }
 0xb1a   :  { %v2248_v27 = vadd.f32 %v2247_v23, %v344_v11 }
 0xb1c   :  { %2249 = vst [vmem:[#allocation10] sm:$0x3] %v2248_v27 }
 0xb1d   :  { %3305 = shalt.err (!%p3302_p8)
}
 0xb1e   :  { %s3306_s0 = scalar_lea.hbm %s4100_s7, 32 }
 0xb1f   :  { %p3307_p9 = scmp.ne.s32.totalorder %s4100_s7, %s3306_s0  ;;  %p3310_p10 = scmp.lt.u32.totalorder %s3306_s0, %s4100_s7 }
 0xb21   :  { %p3312_p11 = pnand %p3310_p10, %p3307_p9 }
 0xb23   :  { %3315 = shalt.err (!%p3312_p11)
}
 0xb24   :  { %2259 = dma.vmem_to_hbm [thread:$0]  %s2257_s15, 32, %s4100_s7, [#allocation4]  }
 0xb25   :  { %3322 = dma.done.wait [#allocation4], 32  }
 0xb26   :  { %3323 = vsyncadd [#allocation4], 4294967264 }
 0xb27   :  { %2263 = vsyncpa [#allocation3], 1 }
 0xb28   :  { %2264 = vsyncpa [#allocation6], 1 }
 0xb29   :  { %2265 = vsyncpa [#allocation9], 1 }
 0xb2a   :  { %2266 = vsyncpa [#allocation4], 1 }

</bundles_post_ra>
